<compile_context>
chip_gen: v6e
topology: v6e:2x2x1
jax: 0.10.0
libtpu: 0.0.40
codegen_flags: <defaults>
</compile_context>

<pallas_src>
import functools

import jax
import jax.numpy as jnp
from jax.experimental import pallas as pl
from jax.experimental.pallas import tpu as pltpu


def _round_up(a, b):
    return ((a + b - 1) // b) * b


def _vmem_capacity_bytes():
    """Per-core VMEM capacity; conservative v7x default if the query fails."""
    try:
        info = pltpu.get_tpu_info()
        cap = getattr(info, "vmem_capacity_bytes", None)
        if cap:
            return int(cap)
    except Exception:
        pass
    return 64 * 1024 * 1024


def _polymlp_skiplora_kernel(alpha_ref,          # SMEM (1,) learnable alpha
                             x_ref,              # (TILE_N, C) native dtype
                             wcat_ref,           # (C, Wtot) [W1 | W23 | W_lora]
                             bcat_ref,           # (1, Wtot) [b1 | b23 | 0]
                             wc_ref,             # (Hp, Op)  C weight, padded
                             vecs_ref,           # (8, Vp)   g1,beta1,g3,beta3,bc
                             out_ref,            # (TILE_N, out_f) x.dtype
                             *, hid, hp, op, out_f, alpha_lora, eps,
                             compute_dtype):
    x = x_ref[...].astype(compute_dtype)

    # One fused MXU matmul for U1, folded U2->U3 and the merged LoRA path.
    y = jnp.dot(x, wcat_ref[...], preferred_element_type=jnp.float32)
    y = y + bcat_ref[...]

    # Full 128-aligned slabs; padded lanes are exactly 0 (zero weight cols,
    # zero bias) so no masking is needed anywhere below.
    out1 = y[:, 0:hp]                       # x @ W1 + b1          (+0 pad)
    out3 = y[:, hp:2 * hp]                  # x @ (W2@W3) + b23    (+0 pad)
    x_lora = y[:, 2 * hp:2 * hp + op]       # x @ W_lora           (+0 pad)

    g1 = vecs_ref[0:1, 0:hp]
    be1 = vecs_ref[1:2, 0:hp]
    g3 = vecs_ref[2:3, 0:hp]
    be3 = vecs_ref[3:4, 0:hp]
    bc = vecs_ref[4:5, 0:op]

    inv_hid = 1.0 / hid
    n_pad_lanes = float(hp - hid)

    def _layernorm(v, g, b):
        # v's padded lanes are exactly 0, so full-width sums divided by the
        # true hid give exact statistics; the (hp-hid)*mu^2 term removes the
        # padded-lane contribution to sum((v-mu)^2).  g/beta padding is 0, so
        # padded output lanes stay exactly 0.
        mu = jnp.sum(v, axis=-1, keepdims=True) * inv_hid
        c = v - mu
        var = (jnp.sum(c * c, axis=-1, keepdims=True)
               - n_pad_lanes * mu * mu) * inv_hid
        return c * jax.lax.rsqrt(var + eps) * g + b

    o1 = _layernorm(out1, g1, be1)
    o3 = _layernorm(out3, g3, be3)

    # second-order (CP) interaction + learnable alpha skip (use_act=False)
    alpha = alpha_ref[0]
    comb = o1 + alpha * (o1 * o3)

    out = jnp.dot(comb.astype(compute_dtype), wc_ref[...],
                  preferred_element_type=jnp.float32)
    out = out + bc + alpha_lora * x_lora

    # Store only the real out_features columns in the caller's dtype: the
    # narrower (possibly masked) store costs far less HBM write traffic than a
    # lane-padded f32 slab in this memory-bound regime.
    out_ref[...] = out[:, :out_f].astype(out_ref.dtype)


def prepare_polymlp_params(params, task, *, compute_dtype=jnp.bfloat16):
    """One-time (per task) parameter prep: fold U2->U3, merge LoRA, pad/pack
    weights and vectors, cast weights for the MXU."""
    if task <= -0.5:
        # TODO(synk): the task <= -0.5 branch of the reference adds the raw
        # reshaped input (shape-mismatching in general); only task >= 0 is
        # supported here.
        raise ValueError("task must be >= 0")

    W1 = params["W1"]
    c_in, hid = W1.shape
    out_f = params["Wc"].shape[1]

    hp = _round_up(hid, 128)
    op = _round_up(out_f, 128)
    vp = max(hp, op)
    wtot = 2 * hp + op

    # Exact algebraic fold of U2 -> U3 (no nonlinearity between them).
    W23 = params["W2"] @ params["W3"]                       # (C, hid)
    b23 = params["b2"] @ params["W3"] + params["b3"]        # (1, hid)

    # Merge active LoRA adapters: (sum_t B_t @ A_t)^T  -> (C, out_f)
    la = params["lora_A"][: task + 1]                       # (T, rank, C)
    lb = params["lora_B"][: task + 1]                       # (T, out_f, rank)
    wl = jnp.einsum("tor,tri->io", lb, la)                  # (C, out_f)

    wcat = jnp.zeros((c_in, wtot), jnp.float32)
    wcat = wcat.at[:, :hid].set(W1)
    wcat = wcat.at[:, hp:hp + hid].set(W23)
    wcat = wcat.at[:, 2 * hp:2 * hp + out_f].set(wl)

    bcat = jnp.zeros((1, wtot), jnp.float32)
    bcat = bcat.at[:, :hid].set(params["b1"])
    bcat = bcat.at[:, hp:hp + hid].set(b23)

    # Wc padded along both K (to hp) and N (to op) so the second dot is fully
    # lane/sublane aligned.
    wc_pad = jnp.zeros((hp, op), jnp.float32).at[:hid, :out_f].set(params["Wc"])

    vecs = jnp.zeros((8, vp), jnp.float32)
    vecs = vecs.at[0, :hid].set(params["g1"][0])
    vecs = vecs.at[1, :hid].set(params["beta1"][0])
    vecs = vecs.at[2, :hid].set(params["g3"][0])
    vecs = vecs.at[3, :hid].set(params["beta3"][0])
    vecs = vecs.at[4, :out_f].set(params["bc"][0])

    return dict(
        alpha=params["alpha"].astype(jnp.float32),
        wcat=wcat.astype(compute_dtype),
        bcat=bcat,                               # f32 (added post-matmul)
        wc=wc_pad.astype(compute_dtype),
        vecs=vecs,                               # f32 (LN / bias stay f32)
        hid=hid, out_f=out_f, hp=hp, op=op, vp=vp, wtot=wtot,
        in_features=c_in, compute_dtype=compute_dtype,
    )


def polymlp_skiplora(x, prep, *, alpha_lora=1.0, tile_n=None, eps=1e-6):
    """Pallas TPU forward of PolyMlp_SkipLoRA using prepared params."""
    B, H, W, C = x.shape
    assert C == prep["in_features"]
    N = B * H * W
    x2 = x.reshape(N, C)                 # no copy; cast inside the kernel

    hid, out_f = prep["hid"], prep["out_f"]
    hp, op, vp, wtot = prep["hp"], prep["op"], prep["vp"], prep["wtot"]
    cd = prep["compute_dtype"]

    x_isz = jnp.dtype(x.dtype).itemsize
    w_isz = jnp.dtype(cd).itemsize
    o_isz = jnp.dtype(x.dtype).itemsize

    # Generation-aware VMEM limit: ~75% of per-core capacity, capped at 96 MiB
    # (=> ~96 MiB on v5e/v6e's 128 MiB parts, ~48 MiB on v7x's 64 MiB).
    vmem_cap = _vmem_capacity_bytes()
    vmem_limit = int(min(vmem_cap * 3 // 4, 96 * 1024 * 1024))

    # Resident (grid-invariant) footprint, conservatively double-buffered.
    fixed = (2 * (C * wtot + hp * op) * w_isz
             + 2 * (wtot + 8 * vp) * 4
             + (2 << 20))                                   # scheduler slack
    # Per-row VMEM: double-buffered x/out tiles + f32 intermediates.
    per_row = (2 * C * x_isz + 2 * out_f * o_isz
               + wtot * 4                                   # fused-matmul y
               + 3 * hp * 4 + op * 4)                       # LN temps / comb

    if tile_n is None:
        budget_rows = max(128, (vmem_limit - fixed) // per_row)
        tile_vmem = max(128, (budget_rows // 128) * 128)
        # Keep >= ~8 grid steps so software pipelining overlaps DMA with
        # compute and both v7x TensorCores get >= 3-4 steps each.
        tile_steps = _round_up(pl.cdiv(N, 8), 128)
        tile_n = int(max(128, min(tile_vmem, 2048, tile_steps)))

    need = fixed + tile_n * per_row
    vmem_bytes = int(min(max(vmem_limit, need + (4 << 20)),
                         max(vmem_cap * 9 // 10, 8 * 1024 * 1024)))

    grid = (pl.cdiv(N, tile_n),)          # ragged last block; no wrapper pad

    out = pl.pallas_call(
        functools.partial(_polymlp_skiplora_kernel, hid=hid, hp=hp, op=op,
                          out_f=out_f, alpha_lora=float(alpha_lora),
                          eps=float(eps), compute_dtype=cd),
        out_shape=jax.ShapeDtypeStruct((N, out_f), x.dtype),
        grid=grid,
        in_specs=[
            pl.BlockSpec(memory_space=pltpu.MemorySpace.SMEM),   # alpha
            pl.BlockSpec((tile_n, C), lambda i: (i, 0)),         # x rows
            pl.BlockSpec((C, wtot), lambda i: (0, 0)),           # [W1|W23|Wlora]
            pl.BlockSpec((1, wtot), lambda i: (0, 0)),           # packed biases
            pl.BlockSpec((hp, op), lambda i: (0, 0)),            # C weight
            pl.BlockSpec((8, vp), lambda i: (0, 0)),             # packed vecs
        ],
        out_specs=pl.BlockSpec((tile_n, out_f), lambda i: (i, 0)),
        compiler_params=pltpu.CompilerParams(
            dimension_semantics=("parallel",),
            vmem_limit_bytes=vmem_bytes),
    )(prep["alpha"], x2, prep["wcat"], prep["bcat"], prep["wc"], prep["vecs"])

    return out.reshape(B, H, W, out_f)


def _reference(x, params, task, alpha_lora):
    """Pure-JAX f32 reference mirroring the PyTorch forward (unfused)."""
    def ln(v, g, b, eps=1e-6):
        mu = jnp.mean(v, axis=-1, keepdims=True)
        var = jnp.mean((v - mu) ** 2, axis=-1, keepdims=True)
        return (v - mu) / jnp.sqrt(var + eps) * g + b

    out1 = x @ params["W1"] + params["b1"]
    out2 = x @ params["W2"] + params["b2"]
    out3 = out2 @ params["W3"] + params["b3"]
    out1 = ln(out1, params["g1"], params["beta1"])
    out3 = ln(out3, params["g3"], params["beta3"])
    out_so = out1 * out3
    out1 = out1 + params["alpha"][0] * out_so
    out = out1 @ params["Wc"] + params["bc"]
    la = params["lora_A"][: task + 1]
    lb = params["lora_B"][: task + 1]
    w_lora = jnp.einsum("tor,tri->oi", lb, la)
    return out + alpha_lora * (x @ w_lora.T)


# TODO(synk): use_spatial (Spatial_Shift) and the get_feat/get_cur_feat running
# covariance buffers are stateful / disabled-by-default paths and are not
# implemented in this kernel.

if __name__ == "__main__":
    key = jax.random.PRNGKey(0)
    B, H, W, C = 2, 16, 16, 32
    hidden = 32
    out_f = 32                      # out_features defaults to in_features
    rank, n_tasks = 10, 10
    keys = jax.random.split(key, 8)

    def kaiming(k, shape, fan_in):
        return jax.random.normal(k, shape, jnp.float32) * (2.0 / fan_in) ** 0.5

    params = {
        # weights stored transposed: (in, out)
        "W1": kaiming(keys[0], (C, hidden), C),
        "b1": jnp.ones((1, hidden), jnp.float32),             # nn.init.ones_
        "W2": kaiming(keys[1], (C, hidden // 8), C),
        "b2": jnp.ones((1, hidden // 8), jnp.float32),
        "W3": kaiming(keys[2], (hidden // 8, hidden), hidden // 8),
        "b3": jnp.ones((1, hidden), jnp.float32),
        "g1": jnp.ones((1, hidden), jnp.float32),
        "beta1": jnp.zeros((1, hidden), jnp.float32),
        "g3": jnp.ones((1, hidden), jnp.float32),
        "beta3": jnp.zeros((1, hidden), jnp.float32),
        "Wc": kaiming(keys[3], (hidden, out_f), hidden),
        "bc": jnp.zeros((1, out_f), jnp.float32),
        # LoRA weights kept in native torch orientation (rank,in) / (out,rank)
        "lora_A": jax.random.normal(keys[4], (n_tasks, rank, C), jnp.float32) * 0.1,
        "lora_B": jax.random.normal(keys[5], (n_tasks, out_f, rank), jnp.float32) * 0.1,
        "alpha": jnp.ones((1,), jnp.float32),
    }

    x = jax.random.normal(keys[6], (B, H, W, C), jnp.float32)
    task = 3

    ref = _reference(x, params, task, 1.0)

    # f32 compute path: exact up to fp rounding of the algebraic folds.
    prep32 = prepare_polymlp_params(params, task, compute_dtype=jnp.float32)
    out32 = jax.block_until_ready(polymlp_skiplora(x, prep32, alpha_lora=1.0))
    assert out32.shape == (B, H, W, out_f)
    assert jnp.allclose(out32, ref, atol=1e-4, rtol=1e-4), "f32 path mismatch"

    # bf16 MXU path (default): check relative error against the f32 reference.
    prep16 = prepare_polymlp_params(params, task, compute_dtype=jnp.bfloat16)
    out16 = jax.block_until_ready(polymlp_skiplora(x, prep16, alpha_lora=1.0))
    assert out16.shape == (B, H, W, out_f)
    rel_err = jnp.max(jnp.abs(out16 - ref)) / (jnp.max(jnp.abs(ref)) + 1e-6)
    assert rel_err < 3e-2, f"bf16 path relative error too large: {rel_err}"

    # Ragged-N path (N = 2*15*16 = 480 not divisible by the 128-row tile):
    # exercises the no-wrapper-pad / masked-last-block store.
    x_r = jax.random.normal(keys[7], (2, 15, 16, C), jnp.float32)
    ref_r = _reference(x_r, params, task, 1.0)
    out_r = jax.block_until_ready(polymlp_skiplora(x_r, prep32, alpha_lora=1.0))
    assert out_r.shape == (2, 15, 16, out_f)
    assert jnp.allclose(out_r, ref_r, atol=1e-4, rtol=1e-4), "ragged-N mismatch"

    print("KERNEL_OK")
</pallas_src>

<mosaic_0001>
module attributes {stable_mosaic.version = 11 : i64} {
  func.func @_polymlp_skiplora_kernel(%arg0: i32, %arg1: memref<1xf32, #tpu.memory_space<smem>>, %arg2: memref<128x32xf32, #tpu.memory_space<vmem>>, %arg3: memref<32x384xf32, #tpu.memory_space<vmem>>, %arg4: memref<1x384xf32, #tpu.memory_space<vmem>>, %arg5: memref<128x128xf32, #tpu.memory_space<vmem>>, %arg6: memref<8x128xf32, #tpu.memory_space<vmem>>, %arg7: memref<128x32xf32, #tpu.memory_space<vmem>>) attributes {dimension_semantics = [#tpu.dimension_semantics<parallel>], iteration_bounds = array<i64: 4>, scalar_prefetch = 0 : i64, scratch_operands = 0 : i64, tpu.core_type = #tpu.core_type<tc>, window_params = [{transform_indices = @transform_0, window_bounds = array<i64: 1>}, {transform_indices = @transform_1, window_bounds = array<i64: 128, 32>}, {pipeline_mode = #tpu.pipeline_mode<synchronous>, transform_indices = @transform_2, window_bounds = array<i64: 32, 384>}, {pipeline_mode = #tpu.pipeline_mode<synchronous>, transform_indices = @transform_3, window_bounds = array<i64: 1, 384>}, {pipeline_mode = #tpu.pipeline_mode<synchronous>, transform_indices = @transform_4, window_bounds = array<i64: 128, 128>}, {pipeline_mode = #tpu.pipeline_mode<synchronous>, transform_indices = @transform_5, window_bounds = array<i64: 8, 128>}, {transform_indices = @transform_6, window_bounds = array<i64: 128, 32>}]} {
    %c0 = arith.constant 0 : index
    %c0_0 = arith.constant 0 : index
    %0 = vector.load %arg2[%c0, %c0_0] : memref<128x32xf32, #tpu.memory_space<vmem>>, vector<128x32xf32>
    %c0_1 = arith.constant 0 : index
    %c0_2 = arith.constant 0 : index
    %1 = vector.load %arg3[%c0_1, %c0_2] : memref<32x384xf32, #tpu.memory_space<vmem>>, vector<32x384xf32>
    %cst = arith.constant dense<0.000000e+00> : vector<128x384xf32>
    %2 = tpu.matmul %0, %1, %cst {dimension_numbers = #tpu.dot_dimension_numbers<[1], [0], [0], [1], [0, 0, 1, 1], [], []>} : vector<128x32xf32>, vector<32x384xf32>, vector<128x384xf32> -> vector<128x384xf32>
    %c0_3 = arith.constant 0 : index
    %c0_4 = arith.constant 0 : index
    %3 = vector.load %arg4[%c0_3, %c0_4] : memref<1x384xf32, #tpu.memory_space<vmem>>, vector<1x384xf32>
    %4 = vector.broadcast %3 : vector<1x384xf32> to vector<128x384xf32>
    %5 = arith.addf %2, %4 : vector<128x384xf32>
    %6 = vector.extract_strided_slice %5 {offsets = [0, 0], sizes = [128, 128], strides = [1, 1]} : vector<128x384xf32> to vector<128x128xf32>
    %7 = vector.extract_strided_slice %5 {offsets = [0, 128], sizes = [128, 128], strides = [1, 1]} : vector<128x384xf32> to vector<128x128xf32>
    %8 = vector.extract_strided_slice %5 {offsets = [0, 256], sizes = [128, 128], strides = [1, 1]} : vector<128x384xf32> to vector<128x128xf32>
    %c0_5 = arith.constant 0 : index
    %c0_6 = arith.constant 0 : index
    %9 = vector.load %arg6[%c0_5, %c0_6] : memref<8x128xf32, #tpu.memory_space<vmem>>, vector<1x128xf32>
    %c1 = arith.constant 1 : index
    %c0_7 = arith.constant 0 : index
    %10 = vector.load %arg6[%c1, %c0_7] : memref<8x128xf32, #tpu.memory_space<vmem>>, vector<1x128xf32>
    %c2 = arith.constant 2 : index
    %c0_8 = arith.constant 0 : index
    %11 = vector.load %arg6[%c2, %c0_8] : memref<8x128xf32, #tpu.memory_space<vmem>>, vector<1x128xf32>
    %c3 = arith.constant 3 : index
    %c0_9 = arith.constant 0 : index
    %12 = vector.load %arg6[%c3, %c0_9] : memref<8x128xf32, #tpu.memory_space<vmem>>, vector<1x128xf32>
    %c4 = arith.constant 4 : index
    %c0_10 = arith.constant 0 : index
    %13 = vector.load %arg6[%c4, %c0_10] : memref<8x128xf32, #tpu.memory_space<vmem>>, vector<1x128xf32>
    %cst_11 = arith.constant dense<0.000000e+00> : vector<128xf32>
    %14 = vector.multi_reduction <add>, %6, %cst_11 [1] : vector<128x128xf32> to vector<128xf32>
    %15 = vector.shape_cast %14 : vector<128xf32> to vector<128x1xf32>
    %cst_12 = arith.constant 3.125000e-02 : f32
    %16 = vector.broadcast %cst_12 : f32 to vector<128x1xf32>
    %17 = arith.mulf %15, %16 : vector<128x1xf32>
    %18 = vector.broadcast %17 : vector<128x1xf32> to vector<128x128xf32>
    %19 = arith.subf %6, %18 : vector<128x128xf32>
    %20 = arith.mulf %19, %19 : vector<128x128xf32>
    %cst_13 = arith.constant dense<0.000000e+00> : vector<128xf32>
    %21 = vector.multi_reduction <add>, %20, %cst_13 [1] : vector<128x128xf32> to vector<128xf32>
    %22 = vector.shape_cast %21 : vector<128xf32> to vector<128x1xf32>
    %cst_14 = arith.constant 9.600000e+01 : f32
    %23 = vector.broadcast %cst_14 : f32 to vector<128x1xf32>
    %24 = arith.mulf %23, %17 : vector<128x1xf32>
    %25 = arith.mulf %24, %17 : vector<128x1xf32>
    %26 = arith.subf %22, %25 : vector<128x1xf32>
    %cst_15 = arith.constant 3.125000e-02 : f32
    %27 = vector.broadcast %cst_15 : f32 to vector<128x1xf32>
    %28 = arith.mulf %26, %27 : vector<128x1xf32>
    %cst_16 = arith.constant 9.99999997E-7 : f32
    %29 = vector.broadcast %cst_16 : f32 to vector<128x1xf32>
    %30 = arith.addf %28, %29 : vector<128x1xf32>
    %31 = math.rsqrt %30 : vector<128x1xf32>
    %32 = vector.broadcast %31 : vector<128x1xf32> to vector<128x128xf32>
    %33 = arith.mulf %19, %32 : vector<128x128xf32>
    %34 = vector.broadcast %9 : vector<1x128xf32> to vector<128x128xf32>
    %35 = arith.mulf %33, %34 : vector<128x128xf32>
    %36 = vector.broadcast %10 : vector<1x128xf32> to vector<128x128xf32>
    %37 = arith.addf %35, %36 : vector<128x128xf32>
    %cst_17 = arith.constant dense<0.000000e+00> : vector<128xf32>
    %38 = vector.multi_reduction <add>, %7, %cst_17 [1] : vector<128x128xf32> to vector<128xf32>
    %39 = vector.shape_cast %38 : vector<128xf32> to vector<128x1xf32>
    %cst_18 = arith.constant 3.125000e-02 : f32
    %40 = vector.broadcast %cst_18 : f32 to vector<128x1xf32>
    %41 = arith.mulf %39, %40 : vector<128x1xf32>
    %42 = vector.broadcast %41 : vector<128x1xf32> to vector<128x128xf32>
    %43 = arith.subf %7, %42 : vector<128x128xf32>
    %44 = arith.mulf %43, %43 : vector<128x128xf32>
    %cst_19 = arith.constant dense<0.000000e+00> : vector<128xf32>
    %45 = vector.multi_reduction <add>, %44, %cst_19 [1] : vector<128x128xf32> to vector<128xf32>
    %46 = vector.shape_cast %45 : vector<128xf32> to vector<128x1xf32>
    %cst_20 = arith.constant 9.600000e+01 : f32
    %47 = vector.broadcast %cst_20 : f32 to vector<128x1xf32>
    %48 = arith.mulf %47, %41 : vector<128x1xf32>
    %49 = arith.mulf %48, %41 : vector<128x1xf32>
    %50 = arith.subf %46, %49 : vector<128x1xf32>
    %cst_21 = arith.constant 3.125000e-02 : f32
    %51 = vector.broadcast %cst_21 : f32 to vector<128x1xf32>
    %52 = arith.mulf %50, %51 : vector<128x1xf32>
    %cst_22 = arith.constant 9.99999997E-7 : f32
    %53 = vector.broadcast %cst_22 : f32 to vector<128x1xf32>
    %54 = arith.addf %52, %53 : vector<128x1xf32>
    %55 = math.rsqrt %54 : vector<128x1xf32>
    %56 = vector.broadcast %55 : vector<128x1xf32> to vector<128x128xf32>
    %57 = arith.mulf %43, %56 : vector<128x128xf32>
    %58 = vector.broadcast %11 : vector<1x128xf32> to vector<128x128xf32>
    %59 = arith.mulf %57, %58 : vector<128x128xf32>
    %60 = vector.broadcast %12 : vector<1x128xf32> to vector<128x128xf32>
    %61 = arith.addf %59, %60 : vector<128x128xf32>
    %c0_23 = arith.constant 0 : index
    %62 = memref.load %arg1[%c0_23] : memref<1xf32, #tpu.memory_space<smem>>
    %63 = arith.mulf %37, %61 : vector<128x128xf32>
    %64 = vector.broadcast %62 : f32 to vector<128x128xf32>
    %65 = arith.mulf %64, %63 : vector<128x128xf32>
    %66 = arith.addf %37, %65 : vector<128x128xf32>
    %c0_24 = arith.constant 0 : index
    %c0_25 = arith.constant 0 : index
    %67 = vector.load %arg5[%c0_24, %c0_25] : memref<128x128xf32, #tpu.memory_space<vmem>>, vector<128x128xf32>
    %cst_26 = arith.constant dense<0.000000e+00> : vector<128x128xf32>
    %68 = tpu.matmul %66, %67, %cst_26 {dimension_numbers = #tpu.dot_dimension_numbers<[1], [0], [0], [1], [0, 0, 1, 1], [], []>} : vector<128x128xf32>, vector<128x128xf32>, vector<128x128xf32> -> vector<128x128xf32>
    %69 = vector.broadcast %13 : vector<1x128xf32> to vector<128x128xf32>
    %70 = arith.addf %68, %69 : vector<128x128xf32>
    %cst_27 = arith.constant 1.000000e+00 : f32
    %71 = vector.broadcast %cst_27 : f32 to vector<128x128xf32>
    %72 = arith.mulf %71, %8 : vector<128x128xf32>
    %73 = arith.addf %70, %72 : vector<128x128xf32>
    %74 = vector.extract_strided_slice %73 {offsets = [0, 0], sizes = [128, 32], strides = [1, 1]} : vector<128x128xf32> to vector<128x32xf32>
    %c0_28 = arith.constant 0 : index
    %c0_29 = arith.constant 0 : index
    %75 = vector.load %arg7[%c0_28, %c0_29] : memref<128x32xf32, #tpu.memory_space<vmem>>, vector<128x32xf32>
    tpu.vector_store %arg7[%c0_28, %c0_29], %74 {strides = array<i32>} : memref<128x32xf32, #tpu.memory_space<vmem>>, vector<128x32xf32>,
    return
  }
  func.func @transform_0(%arg0: i32) -> i32 {
    %c0_i32 = arith.constant 0 : i32
    %c0_i32_0 = arith.constant 0 : i32
    return %c0_i32 : i32
  }
  func.func @transform_1(%arg0: i32) -> (i32, i32) {
    %c0_i32 = arith.constant 0 : i32
    %c0_i32_0 = arith.constant 0 : i32
    return %arg0, %c0_i32 : i32, i32
  }
  func.func @transform_2(%arg0: i32) -> (i32, i32) {
    %c0_i32 = arith.constant 0 : i32
    %c0_i32_0 = arith.constant 0 : i32
    %c0_i32_1 = arith.constant 0 : i32
    return %c0_i32, %c0_i32_0 : i32, i32
  }
  func.func @transform_3(%arg0: i32) -> (i32, i32) {
    %c0_i32 = arith.constant 0 : i32
    %c0_i32_0 = arith.constant 0 : i32
    %c0_i32_1 = arith.constant 0 : i32
    return %c0_i32, %c0_i32_0 : i32, i32
  }
  func.func @transform_4(%arg0: i32) -> (i32, i32) {
    %c0_i32 = arith.constant 0 : i32
    %c0_i32_0 = arith.constant 0 : i32
    %c0_i32_1 = arith.constant 0 : i32
    return %c0_i32, %c0_i32_0 : i32, i32
  }
  func.func @transform_5(%arg0: i32) -> (i32, i32) {
    %c0_i32 = arith.constant 0 : i32
    %c0_i32_0 = arith.constant 0 : i32
    %c0_i32_1 = arith.constant 0 : i32
    return %c0_i32, %c0_i32_0 : i32, i32
  }
  func.func @transform_6(%arg0: i32) -> (i32, i32) {
    %c0_i32 = arith.constant 0 : i32
    %c0_i32_0 = arith.constant 0 : i32
    return %arg0, %c0_i32 : i32, i32
  }
}

</mosaic_0001>

<bundles_post_ra>
// kernel: tpu_custom_call.1
= control target key start
LH: loop header
LB: loop body
LE: loop exit
PB: predicated region body
PF: predicated region fallthrough
CT: control target
= control target key end

     0   :  { %s1801_s23 = smov 0   ;;  %s2795_s0 = inlined_call_operand.<no memory space> [shape: f32[1], index: 0, kind: input, shape index: {}]   ;;  %s2796_s1 = inlined_call_operand.vmem [shape: f32[512,32], index: 1, kind: input, shape index: {}]   ;;  %s2797_s2 = inlined_call_operand.vmem [shape: f32[32,384], index: 2, kind: input, shape index: {}]   ;;  %s2798_s3 = inlined_call_operand.vmem [shape: f32[1,384], index: 3, kind: input, shape index: {}]   ;;  %s2799_s4 = inlined_call_operand.vmem [shape: f32[128,128], index: 4, kind: input, shape index: {}]   ;;  %s2800_s5 = inlined_call_operand.vmem [shape: f32[8,128], index: 5, kind: input, shape index: {}]   ;;  %s2801_s6 = inlined_call_operand.vmem [shape: f32[512,32], index: 6, kind: output, shape index: {}]  }
   0x1   :  { %11 = sst [smem:[#allocation2]] %s2795_s0 }
   0x2 LB: > { %s1492_s24 = sadd.s32 4294967295, %s1760_s23   ;;  %p1496_p0 = scmp.ge.s32.totalorder %s1760_s23, 1  ;;  %s1760_s23 = sphi %s1801_s23, %s17_s23  }
   0x3   : > { %p214_p1 = scmp.lt.s32.totalorder %s1760_s23, 5 }
   0x5   : > { %p215_p2 = pnand %p1496_p0, %p214_p1 }
   0x7   : > { %218 = sbr.rel (%p215_p2) target bundleno = 794 (0x31a), region = 44 }
   0xc   : > { %v282_v0 = vld [vmem:[%s2797_s2 + $0x50] sm:$0xff]  ;;  %v281_v1 = vld [vmem:[%s2797_s2 + $0x48] sm:$0xff]  ;;  %v279_v2 = vld [vmem:[%s2797_s2 + $0x38] sm:$0xff]  ;;  %s1497_s30 = sshll.u32 %s1492_s24, 4  ;;  %v1762_v4 = vmov 0.0   ;;  %vm301_vm0 = vcmask 261120   ;;  %v286_v25 = vlaneseq }
   0xd   : > { %374 = vmatprep.subr.mxu0 %v282_v0  ;;  %v278_v3 = vld [vmem:[%s2797_s2 + $0x30] sm:$0xff]  ;;  %414 = vmatprep.mubr.f32.mxu0 %v1762_v4  ;;  %p245_p3 = scmp.lt.s32.totalorder %s1497_s30, 63  ;;  %v276_v5 = vld [vmem:[%s2797_s2 + $0x20] sm:$0xff]  ;;  %v275_v6 = vld [vmem:[%s2797_s2 + $0x18] sm:$0xff]  ;;  %s2463_s19 = sld [smem:[#allocation2]] }
   0xe   : > { %375 = vmatpush1.msra.mxu0 %v281_v1  ;;  %v273_v7 = vld [vmem:[%s2797_s2 + $0x8] sm:$0xff]  ;;  %v272_v8 = vld [vmem:[%s2797_s2] sm:$0xff]  ;;  %v1937_v26 = vshrl.u32 %v286_v25, 7 }
   0xf   : > { %376 = vmatprep.subr.mxu0 %v279_v2  ;;  %s2866_s30 = smov (!%p245_p3, %s1497_s30), 63  ;;  %v284_v28 = vld [vmem:[%s2798_s3] sm:$0x7] }
  0x10   : > { %377 = vmatpush1.msra.mxu0 %v278_v3  ;;  %s1498_s17 = sshll.u32 %s2866_s30, 3  ;;  %2823 = vst [vmem:[#allocation3_spill] sm:$0xff] %v1937_v26  ;;  %v288_v27 = vsub.s32 0, %v1937_v26  ;;  %v292_v30 = vsub.s32 1, %v1937_v26 }
  0x11   : > { %378 = vmatprep.subr.mxu0 %v276_v5  ;;  %s1842_s20 = scalar_lea.vmem %s2796_s1, %s1498_s17  ;;  %s2723_s11 = scalar_lea.vmem %s2801_s6, %s1498_s17 }
  0x12   : > { %379 = vmatpush1.msra.mxu0 %v275_v6  ;;  %v256_v9 = vld [vmem:[%s1842_s20] sm:$0xff]  ;;  %v1849_v10 = vld [vmem:[%s1842_s20 + $0x8] sm:$0xff]  ;;  %v1855_v11 = vld [vmem:[%s1842_s20 + $0x10] sm:$0xff]  ;;  %v1943_v29 = vrot.slane %v284_v28, %v288_v27  ;;  %v1949_v33 = vrot.slane %v284_v28, %v292_v30 }
  0x13   : > { %380 = vmatprep.subr.mxu0 %v273_v7  ;;  %1600 = vmatprep.mubr.msk.f32.mxu1 %vm301_vm0, %v256_v9  ;;  %v1861_v12 = vld [vmem:[%s1842_s20 + $0x18] sm:$0xff]  ;;  %v1867_v13 = vld [vmem:[%s1842_s20 + $0x20] sm:$0xff]  ;;  %v1873_v14 = vld [vmem:[%s1842_s20 + $0x28] sm:$0xff] }
  0x14   : > { %381 = vmatpush1.msra.mxu0 %v272_v8  ;;  %v1879_v15 = vld [vmem:[%s1842_s20 + $0x30] sm:$0xff]  ;;  %v1885_v16 = vld [vmem:[%s1842_s20 + $0x38] sm:$0xff]  ;;  %v1891_v17 = vld [vmem:[%s1842_s20 + $0x40] sm:$0xff] }
  0x15   : > { %1501 = vmatmul.mubr.msk.f32.vlgmr.msra.gmra.mxu0 %vm301_vm0, %v256_v9  ;;  %v1897_v18 = vld [vmem:[%s1842_s20 + $0x48] sm:$0xff]  ;;  %v1903_v19 = vld [vmem:[%s1842_s20 + $0x50] sm:$0xff]  ;;  %v1909_v20 = vld [vmem:[%s1842_s20 + $0x58] sm:$0xff] }
  0x16   : > { %420 = vmatprep.mubr.f32.mxu0 %v1762_v4  ;;  %v1915_v21 = vld [vmem:[%s1842_s20 + $0x60] sm:$0xff]  ;;  %v1921_v22 = vld [vmem:[%s1842_s20 + $0x68] sm:$0xff]  ;;  %v1927_v23 = vld [vmem:[%s1842_s20 + $0x70] sm:$0xff] }
  0x17   : > { %v1933_v24 = vld [vmem:[%s1842_s20 + $0x78] sm:$0xff] }
  0x19   : > { %1502 = vmatmul.mubr.msk.f32.gmra.mxu0 %vm301_vm0, %v1849_v10 }
  0x1a   : > { %426 = vmatprep.mubr.f32.mxu0 %v1762_v4 }
  0x1d   : > { %1503 = vmatmul.mubr.msk.f32.gmra.mxu0 %vm301_vm0, %v1855_v11 }
  0x1e   : > { %432 = vmatprep.mubr.f32.mxu0 %v1762_v4 }
  0x21   : > { %1504 = vmatmul.mubr.msk.f32.gmra.mxu0 %vm301_vm0, %v1861_v12 }
  0x22   : > { %438 = vmatprep.mubr.f32.mxu0 %v1762_v4 }
  0x25   : > { %1505 = vmatmul.mubr.msk.f32.gmra.mxu0 %vm301_vm0, %v1867_v13 }
  0x26   : > { %444 = vmatprep.mubr.f32.mxu0 %v1762_v4 }
  0x29   : > { %1506 = vmatmul.mubr.msk.f32.gmra.mxu0 %vm301_vm0, %v1873_v14 }
  0x2a   : > { %450 = vmatprep.mubr.f32.mxu0 %v1762_v4 }
  0x2d   : > { %1507 = vmatmul.mubr.msk.f32.gmra.mxu0 %vm301_vm0, %v1879_v15 }
  0x2e   : > { %456 = vmatprep.mubr.f32.mxu0 %v1762_v4 }
  0x31   : > { %1508 = vmatmul.mubr.msk.f32.gmra.mxu0 %vm301_vm0, %v1885_v16 }
  0x32   : > { %462 = vmatprep.mubr.f32.mxu0 %v1762_v4 }
  0x35   : > { %1509 = vmatmul.mubr.msk.f32.gmra.mxu0 %vm301_vm0, %v1891_v17 }
  0x36   : > { %468 = vmatprep.mubr.f32.mxu0 %v1762_v4 }
  0x39   : > { %1510 = vmatmul.mubr.msk.f32.gmra.mxu0 %vm301_vm0, %v1897_v18 }
  0x3a   : > { %474 = vmatprep.mubr.f32.mxu0 %v1762_v4 }
  0x3d   : > { %1511 = vmatmul.mubr.msk.f32.gmra.mxu0 %vm301_vm0, %v1903_v19 }
  0x3e   : > { %480 = vmatprep.mubr.f32.mxu0 %v1762_v4 }
  0x41   : > { %1512 = vmatmul.mubr.msk.f32.gmra.mxu0 %vm301_vm0, %v1909_v20 }
  0x42   : > { %486 = vmatprep.mubr.f32.mxu0 %v1762_v4 }
  0x45   : > { %1513 = vmatmul.mubr.msk.f32.gmra.mxu0 %vm301_vm0, %v1915_v21 }
  0x46   : > { %492 = vmatprep.mubr.f32.mxu0 %v1762_v4 }
  0x49   : > { %1514 = vmatmul.mubr.msk.f32.gmra.mxu0 %vm301_vm0, %v1921_v22 }
  0x4a   : > { %498 = vmatprep.mubr.f32.mxu0 %v1762_v4 }
  0x4d   : > { %1515 = vmatmul.mubr.msk.f32.gmra.mxu0 %vm301_vm0, %v1927_v23 }
  0x4e   : > { %504 = vmatprep.mubr.f32.mxu0 %v1762_v4 }
  0x51   : > { %1516 = vmatmul.mubr.msk.f32.gmra.mxu0 %vm301_vm0, %v1933_v24 }
  0xd5   : > { %v416_v31 = vpop.f32.mrf.mxu0 }
  0xd6   : > { %v1947_v32 = vadd.f32 %v416_v31, %v1943_v29 }
  0xd7   : > { %v418_v34 = vpop.f32.mrf.mxu0 }
  0xd8   : > { %661 = vadd.xlane.f32.xlu0 %v1947_v32  ;;  %v1953_v36 = vadd.f32 %v418_v34, %v1949_v33 }
  0xd9   : > { %v422_v35 = vpop.f32.mrf.mxu0 }
  0xda   : > { %v1956_v37 = vadd.f32 %v422_v35, %v1943_v29 }
  0xdb   : > { %v424_v38 = vpop.f32.mrf.mxu0 }
  0xdc   : > { %663 = vadd.xlane.f32.xlu1 %v1956_v37  ;;  %925 = vadd.xlane.f32.xlu0 %v1953_v36  ;;  %v1961_v40 = vadd.f32 %v424_v38, %v1949_v33 }
  0xdd   : > { %v428_v39 = vpop.f32.mrf.mxu0 }
  0xde   : > { %v1964_v41 = vadd.f32 %v428_v39, %v1943_v29 }
  0xdf   : > { %v430_v42 = vpop.f32.mrf.mxu0 }
  0xe0   : > { %927 = vadd.xlane.f32.xlu1 %v1961_v40  ;;  %665 = vadd.xlane.f32.xlu0 %v1964_v41  ;;  %v1969_v44 = vadd.f32 %v430_v42, %v1949_v33 }
  0xe1   : > { %v434_v43 = vpop.f32.mrf.mxu0 }
  0xe2   : > { %v1972_v45 = vadd.f32 %v434_v43, %v1943_v29 }
  0xe3   : > { %v436_v46 = vpop.f32.mrf.mxu0 }
  0xe4   : > { %929 = vadd.xlane.f32.xlu1 %v1969_v44  ;;  %667 = vadd.xlane.f32.xlu0 %v1972_v45  ;;  %v1977_v48 = vadd.f32 %v436_v46, %v1949_v33 }
  0xe5   : > { %v440_v47 = vpop.f32.mrf.mxu0 }
  0xe6   : > { %v1980_v49 = vadd.f32 %v440_v47, %v1943_v29 }
  0xe7   : > { %v442_v50 = vpop.f32.mrf.mxu0 }
  0xe8   : > { %931 = vadd.xlane.f32.xlu1 %v1977_v48  ;;  %669 = vadd.xlane.f32.xlu0 %v1980_v49  ;;  %v1985_v52 = vadd.f32 %v442_v50, %v1949_v33 }
  0xe9   : > { %v446_v51 = vpop.f32.mrf.mxu0 }
  0xea   : > { %v1988_v53 = vadd.f32 %v446_v51, %v1943_v29 }
  0xeb   : > { %v448_v54 = vpop.f32.mrf.mxu0 }
  0xec   : > { %933 = vadd.xlane.f32.xlu1 %v1985_v52  ;;  %671 = vadd.xlane.f32.xlu0 %v1988_v53  ;;  %v1993_v56 = vadd.f32 %v448_v54, %v1949_v33 }
  0xed   : > { %v452_v55 = vpop.f32.mrf.mxu0 }
  0xee   : > { %v1996_v57 = vadd.f32 %v452_v55, %v1943_v29 }
  0xef   : > { %v454_v58 = vpop.f32.mrf.mxu0 }
  0xf0   : > { %935 = vadd.xlane.f32.xlu1 %v1993_v56  ;;  %673 = vadd.xlane.f32.xlu0 %v1996_v57  ;;  %v2001_v60 = vadd.f32 %v454_v58, %v1949_v33 }
  0xf1   : > { %v458_v59 = vpop.f32.mrf.mxu0 }
  0xf2   : > { %v2004_v61 = vadd.f32 %v458_v59, %v1943_v29 }
  0xf3   : > { %v460_v62 = vpop.f32.mrf.mxu0 }
  0xf4   : > { %937 = vadd.xlane.f32.xlu1 %v2001_v60  ;;  %675 = vadd.xlane.f32.xlu0 %v2004_v61  ;;  %v2009_v0 = vadd.f32 %v460_v62, %v1949_v33 }
  0xf5   : > { %v464_v63 = vpop.f32.mrf.mxu0 }
  0xf6   : > { %v2012_v1 = vadd.f32 %v464_v63, %v1943_v29 }
  0xf7   : > { %v466_v2 = vpop.f32.mrf.mxu0 }
  0xf8   : > { %939 = vadd.xlane.f32.xlu1 %v2009_v0  ;;  %677 = vadd.xlane.f32.xlu0 %v2012_v1  ;;  %v2017_v4 = vadd.f32 %v466_v2, %v1949_v33 }
  0xf9   : > { %v470_v3 = vpop.f32.mrf.mxu0 }
  0xfa   : > { %v2020_v5 = vadd.f32 %v470_v3, %v1943_v29  ;;  %v283_v3 = vld [vmem:[%s2797_s2 + $0x58] sm:$0xff] }
  0xfb   : > { %v472_v6 = vpop.f32.mrf.mxu0  ;;  %1592 = vmatprep.subr.mxu1 %v283_v3 }
  0xfc   : > { %941 = vadd.xlane.f32.xlu1 %v2017_v4  ;;  %679 = vadd.xlane.f32.xlu0 %v2020_v5  ;;  %v2025_v8 = vadd.f32 %v472_v6, %v1949_v33 }
  0xfd   : > { %v476_v7 = vpop.f32.mrf.mxu0  ;;  %1593 = vmatpush3.msra.mxu1 %v283_v3 }
  0xfe   : > { %v2028_v9 = vadd.f32 %v476_v7, %v1943_v29 }
  0xff   : > { %v478_v25 = vpop.f32.mrf.mxu0 }
 0x100   : > { %943 = vadd.xlane.f32.xlu1 %v2025_v8  ;;  %681 = vadd.xlane.f32.xlu0 %v2028_v9  ;;  %v2033_v28 = vadd.f32 %v478_v25, %v1949_v33 }
 0x101   : > { %v482_v27 = vpop.f32.mrf.mxu0 }
 0x102   : > { %v2036_v30 = vadd.f32 %v482_v27, %v1943_v29 }
 0x103   : > { %v484_v31 = vpop.f32.mrf.mxu0 }
 0x104   : > { %945 = vadd.xlane.f32.xlu1 %v2033_v28  ;;  %683 = vadd.xlane.f32.xlu0 %v2036_v30  ;;  %v2041_v35 = vadd.f32 %v484_v31, %v1949_v33 }
 0x105   : > { %v488_v34 = vpop.f32.mrf.mxu0 }
 0x106   : > { %v2044_v38 = vadd.f32 %v488_v34, %v1943_v29 }
 0x107   : > { %v490_v39 = vpop.f32.mrf.mxu0 }
 0x108   : > { %947 = vadd.xlane.f32.xlu1 %v2041_v35  ;;  %685 = vadd.xlane.f32.xlu0 %v2044_v38  ;;  %v2049_v43 = vadd.f32 %v490_v39, %v1949_v33 }
 0x109   : > { %v494_v42 = vpop.f32.mrf.mxu0 }
 0x10a   : > { %v2052_v46 = vadd.f32 %v494_v42, %v1943_v29 }
 0x10b   : > { %v496_v47 = vpop.f32.mrf.mxu0 }
 0x10c   : > { %949 = vadd.xlane.f32.xlu1 %v2049_v43  ;;  %687 = vadd.xlane.f32.xlu0 %v2052_v46  ;;  %v2057_v51 = vadd.f32 %v496_v47, %v1949_v33 }
 0x10d   : > { %v500_v50 = vpop.f32.mrf.mxu0 }
 0x10e   : > { %v2060_v54 = vadd.f32 %v500_v50, %v1943_v29 }
 0x10f   : > { %v502_v55 = vpop.f32.mrf.mxu0 }
 0x110   : > { %951 = vadd.xlane.f32.xlu1 %v2057_v51  ;;  %689 = vadd.xlane.f32.xlu0 %v2060_v54  ;;  %v2065_v59 = vadd.f32 %v502_v55, %v1949_v33 }
 0x111   : > { %v506_v58 = vpop.f32.mrf.mxu0 }
 0x112   : > { %v2068_v62 = vadd.f32 %v506_v58, %v1943_v29 }
 0x113   : > { %v508_v63 = vpop.f32.mrf.mxu0 }
 0x114   : > { %953 = vadd.xlane.f32.xlu1 %v2065_v59  ;;  %691 = vadd.xlane.f32.xlu0 %v2068_v62  ;;  %v2073_v2 = vadd.f32 %v508_v63, %v1949_v33 }
 0x118   : > { %955 = vadd.xlane.f32.xlu1 %v2073_v2 }
 0x161   : > { %v662_v6 = vpop.xlane.xlu0 %661 }
 0x162   : > { %v2079_v7 = vmul.f32 0.03125, %v662_v6 }
 0x164   : > { %v2083_v29 = vsub.f32 %v1947_v32, %v2079_v7 }
 0x165   : > { %v664_v25 = vpop.xlane.xlu1 %663  ;;  %v926_v27 = vpop.xlane.xlu0 %925 }
 0x166   : > { %v2085_v31 = vmul.f32 0.03125, %v664_v25  ;;  %v2087_v33 = vmul.f32 0.03125, %v926_v27  ;;  %v725_v34 = vmul.f32 %v2083_v29, %v2083_v29 }
 0x168   : > { %741 = vadd.xlane.f32.xlu0 %v725_v34  ;;  %v2093_v39 = vsub.f32 %v1956_v37, %v2085_v31  ;;  %v2097_v42 = vsub.f32 %v1953_v36, %v2087_v33 }
 0x169   : > { %v928_v32 = vpop.xlane.xlu1 %927  ;;  %v666_v47 = vpop.xlane.xlu0 %665 }
 0x16a   : > { %v2099_v50 = vmul.f32 0.03125, %v928_v32  ;;  %v2101_v55 = vmul.f32 0.03125, %v666_v47  ;;  %v726_v58 = vmul.f32 %v2093_v39, %v2093_v39  ;;  %v989_v63 = vmul.f32 %v2097_v42, %v2097_v42 }
 0x16c   : > { %743 = vadd.xlane.f32.xlu0 %v726_v58  ;;  %1005 = vadd.xlane.f32.xlu1 %v989_v63  ;;  %v2109_v37 = vsub.f32 %v1961_v40, %v2099_v50  ;;  %v2113_v36 = vsub.f32 %v1964_v41, %v2101_v55 }
 0x16d   : > { %v930_v3 = vpop.xlane.xlu1 %929  ;;  %v668_v6 = vpop.xlane.xlu0 %667 }
 0x16e   : > { %v2115_v25 = vmul.f32 0.03125, %v930_v3  ;;  %v2117_v27 = vmul.f32 0.03125, %v668_v6  ;;  %v990_v34 = vmul.f32 %v2109_v37, %v2109_v37  ;;  %v727_v32 = vmul.f32 %v2113_v36, %v2113_v36 }
 0x170   : > { %1007 = vadd.xlane.f32.xlu1 %v990_v34  ;;  %745 = vadd.xlane.f32.xlu0 %v727_v32  ;;  %v2125_v40 = vsub.f32 %v1969_v44, %v2115_v25  ;;  %v2129_v41 = vsub.f32 %v1972_v45, %v2117_v27  ;;  %v280_v44 = vld [vmem:[%s2797_s2 + $0x40] sm:$0xff] }
 0x171   : > { %v932_v47 = vpop.xlane.xlu1 %931  ;;  %v670_v58 = vpop.xlane.xlu0 %669  ;;  %1594 = vmatprep.subr.mxu1 %v280_v44 }
 0x172   : > { %2824 = vst [vmem:[#allocation4_spill] sm:$0xff] %v2125_v40  ;;  %2825 = vst [vmem:[#allocation5_spill] sm:$0xff] %v2129_v41  ;;  %v2131_v63 = vmul.f32 0.03125, %v932_v47  ;;  %v2133_v3 = vmul.f32 0.03125, %v670_v58  ;;  %v991_v6 = vmul.f32 %v2125_v40, %v2125_v40  ;;  %v728_v34 = vmul.f32 %v2129_v41, %v2129_v41  ;;  %v277_v47 = vld [vmem:[%s2797_s2 + $0x28] sm:$0xff]  ;;  %1595 = vmatpush3.msra.mxu1 %v280_v44 }
 0x173   : > { %1596 = vmatprep.subr.mxu1 %v277_v47 }
 0x174   : > { %1009 = vadd.xlane.f32.xlu1 %v991_v6  ;;  %747 = vadd.xlane.f32.xlu0 %v728_v34  ;;  %v2144_v45 = vsub.f32 %v1977_v48, %v2131_v63  ;;  %v2148_v32 = vsub.f32 %v1980_v49, %v2133_v3  ;;  %v274_v49 = vld [vmem:[%s2797_s2 + $0x10] sm:$0xff] }
 0x175   : > { %v934_v58 = vpop.xlane.xlu1 %933  ;;  %v672_v26 = vpop.xlane.xlu0 %671  ;;  %1597 = vmatpush3.msra.mxu1 %v277_v47 }
 0x176   : > { %2826 = vst [vmem:[#allocation6_spill] sm:$0xff] %v2144_v45  ;;  %2827 = vst [vmem:[#allocation7_spill] sm:$0xff] %v2148_v32  ;;  %v2153_v41 = vmul.f32 0.03125, %v934_v58  ;;  %v2155_v40 = vmul.f32 0.03125, %v672_v26  ;;  %v992_v6 = vmul.f32 %v2144_v45, %v2144_v45  ;;  %v729_v48 = vmul.f32 %v2148_v32, %v2148_v32  ;;  %1598 = vmatprep.subr.mxu1 %v274_v49 }
 0x177   : > { %1599 = vmatpush3.msra.mxu1 %v274_v49  ;;  %v1253_v49 = vld [vmem:[%s2799_s4 + $0x70] sm:$0xff] }
 0x178   : > { %1011 = vadd.xlane.f32.xlu1 %v992_v6  ;;  %749 = vadd.xlane.f32.xlu0 %v729_v48  ;;  %v2166_v34 = vsub.f32 %v1985_v52, %v2153_v41  ;;  %v2170_v26 = vsub.f32 %v1988_v53, %v2155_v40  ;;  %v1254_v52 = vld [vmem:[%s2799_s4 + $0x78] sm:$0xff] }
 0x179   : > { %v936_v44 = vpop.xlane.xlu1 %935  ;;  %v674_v58 = vpop.xlane.xlu0 %673  ;;  %1601 = vmatmul.mubr.msk.f32.vlgmr.msra.gmra.mxu1 %vm301_vm0, %v1849_v10  ;;  %1624 = vmatprep.subr.mxu1 %v1254_v52 }
 0x17a   : > { %v2172_v32 = vmul.f32 0.03125, %v936_v44  ;;  %v2174_v47 = vmul.f32 0.03125, %v674_v58  ;;  %v993_v45 = vmul.f32 %v2166_v34, %v2166_v34  ;;  %v730_v6 = vmul.f32 %v2170_v26, %v2170_v26  ;;  %1625 = vmatpush3.msra.mxu1 %v1254_v52  ;;  %1603 = vmatprep.mubr.msk.f32.mxu1 %vm301_vm0, %v1855_v11 }
 0x17b   : > { %1626 = vmatprep.subr.mxu1 %v1253_v49 }
 0x17c   : > { %1013 = vadd.xlane.f32.xlu1 %v993_v45  ;;  %751 = vadd.xlane.f32.xlu0 %v730_v6  ;;  %v2187_v53 = vsub.f32 %v1993_v56, %v2172_v32  ;;  %v2191_v48 = vsub.f32 %v1996_v57, %v2174_v47  ;;  %v1252_v6 = vld [vmem:[%s2799_s4 + $0x68] sm:$0xff] }
 0x17d   : > { %v938_v44 = vpop.xlane.xlu1 %937  ;;  %v676_v58 = vpop.xlane.xlu0 %675  ;;  %1604 = vmatmul.mubr.msk.f32.gmra.mxu1 %vm301_vm0, %v1861_v12 }
 0x17e   : > { %2828 = vst [vmem:[#allocation8_spill] sm:$0xff] %v2191_v48  ;;  %v2198_v10 = vmul.f32 0.03125, %v938_v44  ;;  %v2200_v45 = vmul.f32 0.03125, %v676_v58  ;;  %v994_v56 = vmul.f32 %v2187_v53, %v2187_v53  ;;  %v731_v57 = vmul.f32 %v2191_v48, %v2191_v48  ;;  %1627 = vmatpush3.msra.mxu1 %v1253_v49  ;;  %1606 = vmatprep.mubr.msk.f32.mxu1 %vm301_vm0, %v1867_v13 }
 0x17f   : > { %1628 = vmatprep.subr.mxu1 %v1252_v6 }
 0x180   : > { %1015 = vadd.xlane.f32.xlu1 %v994_v56  ;;  %753 = vadd.xlane.f32.xlu0 %v731_v57  ;;  %v2213_v11 = vsub.f32 %v2001_v60, %v2198_v10  ;;  %v2217_v52 = vsub.f32 %v2004_v61, %v2200_v45  ;;  %v1251_v61 = vld [vmem:[%s2799_s4 + $0x60] sm:$0xff]  ;;  %v1250_v57 = vld [vmem:[%s2799_s4 + $0x58] sm:$0xff] }
 0x181   : > { %v940_v44 = vpop.xlane.xlu1 %939  ;;  %v678_v58 = vpop.xlane.xlu0 %677  ;;  %1629 = vmatpush3.msra.mxu1 %v1252_v6 }
 0x182   : > { %v2221_v12 = vmul.f32 0.03125, %v940_v44  ;;  %v2223_v48 = vmul.f32 0.03125, %v678_v58  ;;  %v995_v56 = vmul.f32 %v2213_v11, %v2213_v11  ;;  %v732_v60 = vmul.f32 %v2217_v52, %v2217_v52  ;;  %1630 = vmatprep.subr.mxu1 %v1251_v61  ;;  %1607 = vmatmul.mubr.msk.f32.gmra.mxu1 %vm301_vm0, %v1873_v14 }
 0x183   : > { %1631 = vmatpush3.msra.mxu1 %v1251_v61  ;;  %1609 = vmatprep.mubr.msk.f32.mxu1 %vm301_vm0, %v1879_v15 }
 0x184   : > { %1017 = vadd.xlane.f32.xlu1 %v995_v56  ;;  %755 = vadd.xlane.f32.xlu0 %v732_v60  ;;  %v2234_v13 = vsub.f32 %v2009_v0, %v2221_v12  ;;  %v2238_v49 = vsub.f32 %v2012_v1, %v2223_v48  ;;  %v1249_v60 = vld [vmem:[%s2799_s4 + $0x50] sm:$0xff] }
 0x185   : > { %v942_v44 = vpop.xlane.xlu1 %941  ;;  %v680_v58 = vpop.xlane.xlu0 %679  ;;  %1632 = vmatprep.subr.mxu1 %v1250_v57 }
 0x186   : > { %2829 = vst [vmem:[#allocation9_spill] sm:$0xff] %v2234_v13  ;;  %2830 = vst [vmem:[#allocation10_spill] sm:$0xff] %v2238_v49  ;;  %v2245_v6 = vmul.f32 0.03125, %v942_v44  ;;  %v2247_v56 = vmul.f32 0.03125, %v680_v58  ;;  %v996_v0 = vmul.f32 %v2234_v13, %v2234_v13  ;;  %v733_v1 = vmul.f32 %v2238_v49, %v2238_v49  ;;  %1633 = vmatpush3.msra.mxu1 %v1250_v57 }
 0x187   : > { %1634 = vmatprep.subr.mxu1 %v1249_v60  ;;  %1610 = vmatmul.mubr.msk.f32.gmra.mxu1 %vm301_vm0, %v1885_v16  ;;  %v1247_v16 = vld [vmem:[%s2799_s4 + $0x40] sm:$0xff] }
 0x188   : > { %1019 = vadd.xlane.f32.xlu1 %v996_v0  ;;  %757 = vadd.xlane.f32.xlu0 %v733_v1  ;;  %v2260_v14 = vsub.f32 %v2017_v4, %v2245_v6  ;;  %v2264_v44 = vsub.f32 %v2020_v5, %v2247_v56  ;;  %v1248_v4 = vld [vmem:[%s2799_s4 + $0x48] sm:$0xff] }
 0x189   : > { %v944_v58 = vpop.xlane.xlu1 %943  ;;  %v682_v61 = vpop.xlane.xlu0 %681  ;;  %1635 = vmatpush3.msra.mxu1 %v1249_v60  ;;  %1612 = vmatprep.mubr.msk.f32.mxu1 %vm301_vm0, %v1891_v17 }
 0x18a   : > { %v2266_v49 = vmul.f32 0.03125, %v944_v58  ;;  %v2268_v15 = vmul.f32 0.03125, %v682_v61  ;;  %v997_v13 = vmul.f32 %v2260_v14, %v2260_v14  ;;  %v734_v0 = vmul.f32 %v2264_v44, %v2264_v44  ;;  %1636 = vmatprep.subr.mxu1 %v1248_v4 }
 0x18b   : > { %1637 = vmatpush3.msra.mxu1 %v1248_v4 }
 0x18c   : > { %1021 = vadd.xlane.f32.xlu1 %v997_v13  ;;  %759 = vadd.xlane.f32.xlu0 %v734_v0  ;;  %v2283_v5 = vsub.f32 %v2025_v8, %v2266_v49  ;;  %v2287_v57 = vsub.f32 %v2028_v9, %v2268_v15  ;;  %v1246_v9 = vld [vmem:[%s2799_s4 + $0x38] sm:$0xff] }
 0x18d   : > { %v946_v1 = vpop.xlane.xlu1 %945  ;;  %v684_v58 = vpop.xlane.xlu0 %683  ;;  %1638 = vmatprep.subr.mxu1 %v1247_v16  ;;  %1613 = vmatmul.mubr.msk.f32.gmra.mxu1 %vm301_vm0, %v1897_v18 }
 0x18e   : > { %2831 = vst [vmem:[#allocation11_spill] sm:$0xff] %v2283_v5  ;;  %2832 = vst [vmem:[#allocation12_spill] sm:$0xff] %v2287_v57  ;;  %v2292_v60 = vmul.f32 0.03125, %v946_v1  ;;  %v2294_v17 = vmul.f32 0.03125, %v684_v58  ;;  %v998_v13 = vmul.f32 %v2283_v5, %v2283_v5  ;;  %v735_v8 = vmul.f32 %v2287_v57, %v2287_v57  ;;  %1639 = vmatpush3.msra.mxu1 %v1247_v16 }
 0x18f   : > { %1615 = vmatprep.mubr.msk.f32.mxu1 %vm301_vm0, %v1903_v19  ;;  %1640 = vmatprep.subr.mxu1 %v1246_v9 }
 0x190   : > { %1023 = vadd.xlane.f32.xlu1 %v998_v13  ;;  %761 = vadd.xlane.f32.xlu0 %v735_v8  ;;  %v2307_v61 = vsub.f32 %v2033_v28, %v2292_v60  ;;  %v2311_v0 = vsub.f32 %v2036_v30, %v2294_v17  ;;  %v1245_v30 = vld [vmem:[%s2799_s4 + $0x30] sm:$0xff]  ;;  %v1244_v8 = vld [vmem:[%s2799_s4 + $0x28] sm:$0xff] }
 0x191   : > { %v948_v1 = vpop.xlane.xlu1 %947  ;;  %v686_v4 = vpop.xlane.xlu0 %685  ;;  %1641 = vmatpush3.msra.mxu1 %v1246_v9 }
 0x192   : > { %2833 = vst [vmem:[#allocation13_spill] sm:$0xff] %v2307_v61  ;;  %2834 = vst [vmem:[#allocation14_spill] sm:$0xff] %v2311_v0  ;;  %v2315_v18 = vmul.f32 0.03125, %v948_v1  ;;  %v2317_v58 = vmul.f32 0.03125, %v686_v4  ;;  %v999_v13 = vmul.f32 %v2307_v61, %v2307_v61  ;;  %v736_v28 = vmul.f32 %v2311_v0, %v2311_v0  ;;  %1642 = vmatprep.subr.mxu1 %v1245_v30 }
 0x193   : > { %1616 = vmatmul.mubr.msk.f32.gmra.mxu1 %vm301_vm0, %v1909_v20 }
 0x194   : > { %1025 = vadd.xlane.f32.xlu1 %v999_v13  ;;  %763 = vadd.xlane.f32.xlu0 %v736_v28  ;;  %v2328_v19 = vsub.f32 %v2041_v35, %v2315_v18  ;;  %v2332_v16 = vsub.f32 %v2044_v38, %v2317_v58  ;;  %v1243_v28 = vld [vmem:[%s2799_s4 + $0x20] sm:$0xff] }
 0x195   : > { %v950_v1 = vpop.xlane.xlu1 %949  ;;  %v688_v4 = vpop.xlane.xlu0 %687  ;;  %1643 = vmatpush3.msra.mxu1 %v1245_v30  ;;  %1618 = vmatprep.mubr.msk.f32.mxu1 %vm301_vm0, %v1915_v21 }
 0x196   : > { %2835 = vst [vmem:[#allocation15_spill] sm:$0xff] %v2328_v19  ;;  %2836 = vst [vmem:[#allocation16_spill] sm:$0xff] %v2332_v16  ;;  %v2339_v9 = vmul.f32 0.03125, %v950_v1  ;;  %v2341_v13 = vmul.f32 0.03125, %v688_v4  ;;  %v1000_v35 = vmul.f32 %v2328_v19, %v2328_v19  ;;  %v737_v38 = vmul.f32 %v2332_v16, %v2332_v16  ;;  %1644 = vmatprep.subr.mxu1 %v1244_v8 }
 0x197   : > { %1645 = vmatpush3.msra.mxu1 %v1244_v8 }
 0x198   : > { %1027 = vadd.xlane.f32.xlu1 %v1000_v35  ;;  %765 = vadd.xlane.f32.xlu0 %v737_v38  ;;  %v2354_v20 = vsub.f32 %v2049_v43, %v2339_v9  ;;  %v2358_v1 = vsub.f32 %v2052_v46, %v2341_v13  ;;  %v1242_v43 = vld [vmem:[%s2799_s4 + $0x18] sm:$0xff] }
 0x199   : > { %v952_v4 = vpop.xlane.xlu1 %951  ;;  %v690_v30 = vpop.xlane.xlu0 %689  ;;  %1646 = vmatprep.subr.mxu1 %v1243_v28  ;;  %1619 = vmatmul.mubr.msk.f32.gmra.mxu1 %vm301_vm0, %v1921_v22  ;;  %v1241_v22 = vld [vmem:[%s2799_s4 + $0x10] sm:$0xff] }
 0x19a   : > { %2837 = vst [vmem:[#allocation17_spill] sm:$0xff] %v2354_v20  ;;  %2838 = vst [vmem:[#allocation18_spill] sm:$0xff] %v2358_v1  ;;  %v2360_v16 = vmul.f32 0.03125, %v952_v4  ;;  %v2362_v21 = vmul.f32 0.03125, %v690_v30  ;;  %v1001_v19 = vmul.f32 %v2354_v20, %v2354_v20  ;;  %v738_v35 = vmul.f32 %v2358_v1, %v2358_v1  ;;  %1647 = vmatpush3.msra.mxu1 %v1243_v28 }
 0x19b   : > { %1621 = vmatprep.mubr.msk.f32.mxu1 %vm301_vm0, %v1927_v23  ;;  %1648 = vmatprep.subr.mxu1 %v1242_v43 }
 0x19c   : > { %1029 = vadd.xlane.f32.xlu1 %v1001_v19  ;;  %767 = vadd.xlane.f32.xlu0 %v738_v35  ;;  %v2377_v46 = vsub.f32 %v2057_v51, %v2360_v16  ;;  %v2381_v8 = vsub.f32 %v2060_v54, %v2362_v21  ;;  %v1240_v54 = vld [vmem:[%s2799_s4 + $0x8] sm:$0xff] }
 0x19d   : > { %v954_v38 = vpop.xlane.xlu1 %953  ;;  %v692_v4 = vpop.xlane.xlu0 %691  ;;  %1649 = vmatpush3.msra.mxu1 %v1242_v43 }
 0x19e   : > { %2839 = vst [vmem:[#allocation19_spill] sm:$0xff] %v2377_v46  ;;  %2840 = vst [vmem:[#allocation20_spill] sm:$0xff] %v2381_v8  ;;  %v2386_v28 = vmul.f32 0.03125, %v954_v38  ;;  %v2388_v23 = vmul.f32 0.03125, %v692_v4  ;;  %v1002_v19 = vmul.f32 %v2377_v46, %v2377_v46  ;;  %v739_v51 = vmul.f32 %v2381_v8, %v2381_v8  ;;  %1650 = vmatprep.subr.mxu1 %v1241_v22 }
 0x19f   : > { %1622 = vmatmul.mubr.msk.f32.gmra.mxu1 %vm301_vm0, %v1933_v24 }
 0x1a0   : > { %1031 = vadd.xlane.f32.xlu1 %v1002_v19  ;;  %769 = vadd.xlane.f32.xlu0 %v739_v51  ;;  %v2401_v30 = vsub.f32 %v2065_v59, %v2386_v28  ;;  %v2405_v35 = vsub.f32 %v2068_v62, %v2388_v23  ;;  %v1239_v59 = vld [vmem:[%s2799_s4] sm:$0xff]  ;;  %v773_v19 = vmul.f32 96.0, %v2079_v7  ;;  %v1037_v51 = vmul.f32 96.0, %v2087_v33 }
 0x1a1   : > { %v956_v38 = vpop.xlane.xlu1 %955  ;;  %1651 = vmatpush3.msra.mxu1 %v1241_v22 }
 0x1a2   : > { %2841 = vst [vmem:[#allocation21_spill] sm:$0xff] %v2401_v30  ;;  %2842 = vst [vmem:[#allocation22_spill] sm:$0xff] %v2405_v35  ;;  %v2407_v43 = vmul.f32 0.03125, %v956_v38  ;;  %v1003_v24 = vmul.f32 %v2401_v30, %v2401_v30  ;;  %v740_v4 = vmul.f32 %v2405_v35, %v2405_v35  ;;  %1652 = vmatprep.subr.mxu1 %v1240_v54  ;;  %v774_v38 = vmul.f32 96.0, %v2085_v31 }
 0x1a3   : > { %1653 = vmatpush3.msra.mxu1 %v1240_v54  ;;  %v789_v54 = vmul.f32 %v773_v19, %v2079_v7  ;;  %v776_v30 = vmul.f32 96.0, %v2117_v27  ;;  %v1053_v8 = vmul.f32 %v1037_v51, %v2087_v33  ;;  %v1041_v7 = vmul.f32 96.0, %v2153_v41 }
 0x1a4   : > { %1033 = vadd.xlane.f32.xlu1 %v1003_v24  ;;  %771 = vadd.xlane.f32.xlu0 %v740_v4  ;;  %v2418_v62 = vsub.f32 %v2073_v2, %v2407_v43  ;;  %v1038_v24 = vmul.f32 96.0, %v2099_v50  ;;  %v775_v4 = vmul.f32 96.0, %v2101_v55  ;;  %v1039_v2 = vmul.f32 96.0, %v2115_v25 }
 0x1a5   : > { %1654 = vmatprep.subr.mxu1 %v1239_v59  ;;  %v790_v46 = vmul.f32 %v774_v38, %v2085_v31  ;;  %v778_v19 = vmul.f32 96.0, %v2155_v40  ;;  %v1042_v31 = vmul.f32 96.0, %v2172_v32  ;;  %v779_v33 = vmul.f32 96.0, %v2174_v47 }
 0x1a6   : > { %2843 = vst [vmem:[#allocation23_spill] sm:$0xff] %v2418_v62  ;;  %v1004_v22 = vmul.f32 %v2418_v62, %v2418_v62  ;;  %1655 = vmatpush3.msra.mxu1 %v1239_v59  ;;  %v1040_v59 = vmul.f32 96.0, %v2131_v63  ;;  %v777_v62 = vmul.f32 96.0, %v2133_v3  ;;  %v1054_v20 = vmul.f32 %v1038_v24, %v2099_v50 }
 0x1a7   : > { %v791_v0 = vmul.f32 %v775_v4, %v2101_v55  ;;  %v1055_v61 = vmul.f32 %v1039_v2, %v2115_v25  ;;  %v2447_v55 = vmul.f32 %v1041_v7, %v2153_v41  ;;  %v2450_v25 = vmul.f32 %v778_v19, %v2155_v40 }
 0x1a8   : > { %1035 = vadd.xlane.f32.xlu1 %v1004_v22  ;;  %v793_v50 = vmul.f32 %v777_v62, %v2133_v3  ;;  %v1044_v4 = vmul.f32 96.0, %v2221_v12  ;;  %v2459_v41 = vmul.f32 %v779_v33, %v2174_v47  ;;  %v781_v40 = vmul.f32 96.0, %v2223_v48 }
 0x1a9   : > { %v1045_v3 = vmul.f32 96.0, %v2245_v6  ;;  %v1046_v47 = vmul.f32 96.0, %v2266_v49 }
 0x1aa   : > { %v2474_v33 = vmul.f32 %v1044_v4, %v2221_v12 }
 0x1ab   : > { %v2487_v12 = vmul.f32 %v1046_v47, %v2266_v49  ;;  %v785_v49 = vmul.f32 96.0, %v2317_v58  ;;  %v786_v47 = vmul.f32 96.0, %v2341_v13 }
 0x1f1   : > { %v742_v35 = vpop.xlane.xlu0 %741 }
 0x1f2   : > { %v805_v22 = vsub.f32 %v742_v35, %v789_v54  ;;  %v792_v35 = vmul.f32 %v776_v30, %v2117_v27  ;;  %v2441_v54 = vmul.f32 %v1040_v59, %v2131_v63  ;;  %v1043_v27 = vmul.f32 96.0, %v2198_v10 }
 0x1f3   : > { %v780_v63 = vmul.f32 96.0, %v2200_v45 }
 0x1f4   : > { %v821_v1 = vmul.f32 0.03125, %v805_v22  ;;  %v2466_v59 = vmul.f32 %v1043_v27, %v2198_v10  ;;  %v2480_v10 = vmul.f32 %v1045_v3, %v2245_v6 }
 0x1f5   : > { %v1006_v57 = vpop.xlane.xlu1 %1005  ;;  %v744_v5 = vpop.xlane.xlu0 %743  ;;  %v2469_v7 = vmul.f32 %v780_v63, %v2200_v45  ;;  %v783_v45 = vmul.f32 96.0, %v2268_v15 }
 0x1f6   : > { %v837_v51 = vadd.f32 1e-06, %v821_v1  ;;  %v1069_v38 = vsub.f32 %v1006_v57, %v1053_v8  ;;  %v806_v22 = vsub.f32 %v744_v5, %v790_v46  ;;  %v2456_v5 = vmul.f32 %v1042_v31, %v2172_v32 }
 0x1f7   : > { %v782_v32 = vmul.f32 96.0, %v2247_v56 }
 0x1f8   : > { %1689 = vrsqrt.f32 %v837_v51  ;;  %v1085_v30 = vmul.f32 0.03125, %v1069_v38  ;;  %v822_v24 = vmul.f32 0.03125, %v806_v22 }
 0x1f9   : > { %v1008_v1 = vpop.xlane.xlu1 %1007  ;;  %v746_v57 = vpop.xlane.xlu0 %745 }
 0x1fa   : > { %v1101_v46 = vadd.f32 1e-06, %v1085_v30  ;;  %v838_v8 = vadd.f32 1e-06, %v822_v24  ;;  %v1070_v62 = vsub.f32 %v1008_v1, %v1054_v20  ;;  %v807_v2 = vsub.f32 %v746_v57, %v791_v0 }
 0x1fb   : > { %v2477_v0 = vmul.f32 %v781_v40, %v2223_v48  ;;  %v2484_v30 = vmul.f32 %v782_v32, %v2247_v56  ;;  %v1047_v24 = vmul.f32 96.0, %v2292_v60  ;;  %v784_v48 = vmul.f32 96.0, %v2294_v17 }
 0x1fc   : > { %1691 = vrsqrt.f32 %v1101_v46  ;;  %v1086_v19 = vmul.f32 0.03125, %v1070_v62  ;;  %v823_v31 = vmul.f32 0.03125, %v807_v2  ;;  %v1048_v1 = vmul.f32 96.0, %v2315_v18 }
 0x1fd   : > { %1693 = vrsqrt.f32 %v838_v8  ;;  %v1010_v51 = vpop.xlane.xlu1 %1009  ;;  %v748_v20 = vpop.xlane.xlu0 %747  ;;  %v2496_v56 = vmul.f32 %v783_v45, %v2268_v15  ;;  %v2501_v62 = vmul.f32 %v1047_v24, %v2292_v60  ;;  %v2504_v2 = vmul.f32 %v784_v48, %v2294_v17 }
 0x1fe   : > { %v1102_v38 = vadd.f32 1e-06, %v1086_v19  ;;  %v839_v22 = vadd.f32 1e-06, %v823_v31  ;;  %v1071_v27 = vsub.f32 %v1010_v51, %v1055_v61  ;;  %v808_v63 = vsub.f32 %v748_v20, %v792_v35 }
 0x1ff   : > { %v2493_v61 = vstv %s2463_s19  ;;  %v1049_v32 = vmul.f32 96.0, %v2339_v9  ;;  %v2509_v31 = vmul.f32 %v1048_v1, %v2315_v18  ;;  %v2512_v60 = vmul.f32 %v785_v49, %v2317_v58  ;;  %v2542_v49 = vld [vmem:[%s2800_s5 + $0x2] ss:$0 sm:$0xff] }
 0x200   : > { %1695 = vrsqrt.f32 %v1102_v38  ;;  %v1087_v6 = vmul.f32 0.03125, %v1071_v27  ;;  %v824_v4 = vmul.f32 0.03125, %v808_v63  ;;  %v1050_v17 = vmul.f32 96.0, %v2360_v16 }
 0x201   : > { %1697 = vrsqrt.f32 %v839_v22  ;;  %v1012_v57 = vpop.xlane.xlu1 %1011  ;;  %v750_v40 = vpop.xlane.xlu0 %749  ;;  %v787_v20 = vmul.f32 96.0, %v2362_v21  ;;  %v2520_v63 = vmul.f32 %v1049_v32, %v2339_v9  ;;  %v2523_v24 = vmul.f32 %v786_v47, %v2341_v13 }
 0x202   : > { %v1103_v35 = vadd.f32 1e-06, %v1087_v6  ;;  %v840_v3 = vadd.f32 1e-06, %v824_v4  ;;  %v1072_v46 = vsub.f32 %v1012_v57, %v2441_v54  ;;  %v809_v8 = vsub.f32 %v750_v40, %v793_v50  ;;  %v2529_v4 = vld [vmem:[%s2800_s5] ss:$0 sm:$0xff] }
 0x203   : > { %v1051_v58 = vmul.f32 96.0, %v2386_v28  ;;  %v2533_v1 = vmul.f32 %v1050_v17, %v2360_v16  ;;  %v2536_v13 = vmul.f32 %v787_v20, %v2362_v21  ;;  %v1052_v57 = vmul.f32 96.0, %v2407_v43 }
 0x204   : > { %1699 = vrsqrt.f32 %v1103_v35  ;;  %v1088_v15 = vmul.f32 0.03125, %v1072_v46  ;;  %v825_v19 = vmul.f32 0.03125, %v809_v8 }
 0x205   : > { %v1690_v51 = vpop.eup %1689  ;;  %1701 = vrsqrt.f32 %v840_v3  ;;  %v1014_v54 = vpop.xlane.xlu1 %1013  ;;  %v2550_v47 = vmul.f32 %v1051_v58, %v2386_v28  ;;  %v2568_v17 = vmul.f32 %v1052_v57, %v2407_v43 }
 0x206   : > { %v752_v50 = vpop.xlane.xlu0 %751  ;;  %v1104_v45 = vadd.f32 1e-06, %v1088_v15  ;;  %v841_v38 = vadd.f32 1e-06, %v825_v19  ;;  %v1073_v22 = vsub.f32 %v1014_v54, %v2447_v55  ;;  %v869_v18 = vmul.f32 %v1690_v51, %v2083_v29  ;;  %v2555_v51 = vld [vmem:[%s2800_s5 + $0x1] ss:$0 sm:$0xff] }
 0x207   : > { %v810_v27 = vsub.f32 %v752_v50, %v2450_v25  ;;  %v788_v55 = vmul.f32 96.0, %v2388_v23 }
 0x208   : > { %1703 = vrsqrt.f32 %v1104_v45  ;;  %v1089_v48 = vmul.f32 0.03125, %v1073_v22  ;;  %v889_v32 = vmul.f32 %v2529_v4, %v869_v18 }
 0x209   : > { %v826_v6 = vmul.f32 0.03125, %v810_v27  ;;  %v1692_v25 = vpop.eup %1691  ;;  %1705 = vrsqrt.f32 %v841_v38  ;;  %v1016_v29 = vpop.xlane.xlu1 %1015 }
 0x20a   : > { %v754_v9 = vpop.xlane.xlu0 %753  ;;  %v1694_v40 = vpop.eup %1693  ;;  %v1105_v35 = vadd.f32 1e-06, %v1089_v48  ;;  %v1074_v46 = vsub.f32 %v1016_v29, %v2456_v5  ;;  %v1133_v21 = vmul.f32 %v1692_v25, %v2097_v42  ;;  %v2560_v5 = vld [vmem:[%s2800_s5 + $0x3] ss:$0 sm:$0xff]  ;;  %v909_v18 = vadd.f32 %v2555_v51, %v889_v32  ;;  %v2844_v32 = vld [vmem:[#allocation4_spill] sm:$0xff] }
 0x20b   : > { %v842_v3 = vadd.f32 1e-06, %v826_v6  ;;  %v811_v8 = vsub.f32 %v754_v9, %v2459_v41  ;;  %v870_v16 = vmul.f32 %v1694_v40, %v2093_v39  ;;  %v2563_v39 = vmul.f32 %v788_v55, %v2388_v23 }
 0x20c   : > { %1707 = vrsqrt.f32 %v1105_v35  ;;  %v1090_v15 = vmul.f32 0.03125, %v1074_v46  ;;  %v1153_v54 = vmul.f32 %v2542_v49, %v1133_v21 }
 0x20d   : > { %v827_v19 = vmul.f32 0.03125, %v811_v8  ;;  %v1696_v42 = vpop.eup %1695  ;;  %1709 = vrsqrt.f32 %v842_v3  ;;  %v1018_v28 = vpop.xlane.xlu1 %1017  ;;  %v890_v50 = vmul.f32 %v2529_v4, %v870_v16 }
 0x20e   : > { %v756_v41 = vpop.xlane.xlu0 %755  ;;  %v1698_v20 = vpop.eup %1697  ;;  %v1134_v45 = vmul.f32 %v1696_v42, %v2109_v37  ;;  %v1106_v38 = vadd.f32 1e-06, %v1090_v15  ;;  %v1075_v27 = vsub.f32 %v1018_v28, %v2466_v59  ;;  %v1173_v58 = vadd.f32 %v2560_v5, %v1153_v54 }
 0x20f   : > { %v843_v22 = vadd.f32 1e-06, %v827_v19  ;;  %v812_v23 = vsub.f32 %v756_v41, %v2469_v7  ;;  %v871_v48 = vmul.f32 %v1698_v20, %v2113_v36  ;;  %v910_v55 = vadd.f32 %v2555_v51, %v890_v50  ;;  %v2845_v50 = vld [vmem:[#allocation5_spill] sm:$0xff] }
 0x210   : > { %v1154_v6 = vmul.f32 %v2542_v49, %v1134_v45  ;;  %1711 = vrsqrt.f32 %v1106_v38  ;;  %v1091_v43 = vmul.f32 0.03125, %v1075_v27  ;;  %v1190_v59 = vmul.f32 %v1173_v58, %v909_v18 }
 0x211   : > { %v1700_v25 = vpop.eup %1699  ;;  %1713 = vrsqrt.f32 %v843_v22  ;;  %v828_v37 = vmul.f32 0.03125, %v812_v23  ;;  %v1020_v29 = vpop.xlane.xlu1 %1019  ;;  %v891_v7 = vmul.f32 %v2529_v4, %v871_v48 }
 0x212   : > { %v758_v9 = vpop.xlane.xlu0 %757  ;;  %v1702_v57 = vpop.eup %1701  ;;  %v1107_v40 = vadd.f32 1e-06, %v1091_v43  ;;  %v1076_v35 = vsub.f32 %v1020_v29, %v2474_v33  ;;  %v1174_v3 = vadd.f32 %v2560_v5, %v1154_v6  ;;  %v1207_v8 = vmul.f32 %v2493_v61, %v1190_v59  ;;  %v2846_v43 = vld [vmem:[#allocation6_spill] sm:$0xff]  ;;  %v2847_v29 = vld [vmem:[#allocation7_spill] sm:$0xff] }
 0x213   : > { %v813_v36 = vsub.f32 %v758_v9, %v2477_v0  ;;  %v844_v46 = vadd.f32 1e-06, %v828_v37  ;;  %v911_v16 = vadd.f32 %v2555_v51, %v891_v7  ;;  %v1135_v21 = vmul.f32 %v1700_v25, %v2844_v32 }
 0x214   : > { %1715 = vrsqrt.f32 %v1107_v40  ;;  %v1092_v15 = vmul.f32 0.03125, %v1076_v35  ;;  %v1191_v42 = vmul.f32 %v1174_v3, %v910_v55  ;;  %v1223_v33 = vadd.f32 %v1207_v8, %v909_v18 }
 0x215   : > { %v829_v19 = vmul.f32 0.03125, %v813_v36  ;;  %v1704_v28 = vpop.eup %1703  ;;  %1717 = vrsqrt.f32 %v844_v46  ;;  %v1022_v41 = vpop.xlane.xlu1 %1021  ;;  %v1155_v0 = vmul.f32 %v2542_v49, %v1135_v21  ;;  %v872_v20 = vmul.f32 %v1702_v57, %v2845_v50 }
 0x216   : > { %v760_v54 = vpop.xlane.xlu0 %759  ;;  %v1706_v45 = vpop.eup %1705  ;;  %v1108_v38 = vadd.f32 1e-06, %v1092_v15  ;;  %v1077_v27 = vsub.f32 %v1022_v41, %v2480_v10  ;;  %1656 = vmatprep.mubr.f32.mxu1 %v1223_v33  ;;  %v1208_v58 = vmul.f32 %v2493_v61, %v1191_v42  ;;  %v1136_v18 = vmul.f32 %v1704_v28, %v2846_v43 }
 0x217   : > { %v845_v22 = vadd.f32 1e-06, %v829_v19  ;;  %v814_v23 = vsub.f32 %v760_v54, %v2484_v30  ;;  %v1175_v48 = vadd.f32 %v2560_v5, %v1155_v0  ;;  %v892_v6 = vmul.f32 %v2529_v4, %v872_v20 }
 0x218   : > { %1719 = vrsqrt.f32 %v1108_v38  ;;  %v1093_v25 = vmul.f32 0.03125, %v1077_v27  ;;  %v873_v9 = vmul.f32 %v1706_v45, %v2847_v29  ;;  %v1224_v57 = vadd.f32 %v1208_v58, %v910_v55 }
 0x219   : > { %v830_v37 = vmul.f32 0.03125, %v814_v23  ;;  %v1708_v59 = vpop.eup %1707  ;;  %1721 = vrsqrt.f32 %v845_v22  ;;  %v1024_v7 = vpop.xlane.xlu1 %1023  ;;  %v1192_v30 = vmul.f32 %v1175_v48, %v911_v16  ;;  %v912_v40 = vadd.f32 %v2555_v51, %v892_v6  ;;  %v2848_v48 = vld [vmem:[#allocation8_spill] sm:$0xff] }
 0x21a   : > { %v762_v10 = vpop.xlane.xlu0 %761  ;;  %v1710_v35 = vpop.eup %1709  ;;  %v1109_v36 = vadd.f32 1e-06, %v1093_v25  ;;  %v1078_v46 = vsub.f32 %v1024_v7, %v2487_v12  ;;  %1657 = vmatmul.mubr.f32.vlgmr.msra.gmra.mxu1 %v1224_v57  ;;  %v1156_v21 = vmul.f32 %v2542_v49, %v1136_v18  ;;  %v893_v15 = vmul.f32 %v2529_v4, %v873_v9 }
 0x21b   : > { %v846_v3 = vadd.f32 1e-06, %v830_v37  ;;  %v815_v8 = vsub.f32 %v762_v10, %v2496_v56  ;;  %v1209_v32 = vmul.f32 %v2493_v61, %v1192_v30  ;;  %v1137_v19 = vmul.f32 %v1708_v59, %v2166_v34 }
 0x21c   : > { %1723 = vrsqrt.f32 %v1109_v36  ;;  %v1094_v55 = vmul.f32 0.03125, %v1078_v46  ;;  %v874_v28 = vmul.f32 %v1710_v35, %v2170_v26  ;;  %v1176_v56 = vadd.f32 %v2560_v5, %v1156_v21 }
 0x21d   : > { %v831_v42 = vmul.f32 0.03125, %v815_v8  ;;  %v1712_v41 = vpop.eup %1711  ;;  %1725 = vrsqrt.f32 %v846_v3  ;;  %v1026_v54 = vpop.xlane.xlu1 %1025  ;;  %v1225_v33 = vadd.f32 %v1209_v32, %v911_v16  ;;  %v913_v0 = vadd.f32 %v2555_v51, %v893_v15 }
 0x21e   : > { %v764_v12 = vpop.xlane.xlu0 %763  ;;  %v1714_v50 = vpop.eup %1713  ;;  %v1110_v20 = vadd.f32 1e-06, %v1094_v55  ;;  %v1079_v38 = vsub.f32 %v1026_v54, %v2501_v62  ;;  %v1193_v22 = vmul.f32 %v1176_v56, %v912_v40  ;;  %v1157_v26 = vmul.f32 %v2542_v49, %v1137_v19 }
 0x21f   : > { %v847_v45 = vadd.f32 1e-06, %v831_v42  ;;  %v816_v34 = vsub.f32 %v764_v12, %v2504_v2  ;;  %1659 = vmatprep.mubr.f32.mxu1 %v1225_v33  ;;  %v894_v27 = vmul.f32 %v2529_v4, %v874_v28  ;;  %v1138_v23 = vmul.f32 %v1712_v41, %v2187_v53 }
 0x220   : > { %1727 = vrsqrt.f32 %v1110_v20  ;;  %v1095_v16 = vmul.f32 0.03125, %v1079_v38  ;;  %v875_v6 = vmul.f32 %v1714_v50, %v2848_v48  ;;  %v1210_v62 = vmul.f32 %v2493_v61, %v1193_v22  ;;  %v2849_v50 = vld [vmem:[#allocation9_spill] sm:$0xff] }
 0x221   : > { %v832_v58 = vmul.f32 0.03125, %v816_v34  ;;  %v1716_v43 = vpop.eup %1715  ;;  %1729 = vrsqrt.f32 %v847_v45  ;;  %v1028_v18 = vpop.xlane.xlu1 %1027  ;;  %v1177_v2 = vadd.f32 %v2560_v5, %v1157_v26  ;;  %v914_v37 = vadd.f32 %v2555_v51, %v894_v27 }
 0x222   : > { %v766_v25 = vpop.xlane.xlu0 %765  ;;  %v1718_v29 = vpop.eup %1717  ;;  %v1111_v9 = vadd.f32 1e-06, %v1095_v16  ;;  %v1080_v53 = vsub.f32 %v1028_v18, %v2509_v31  ;;  %v1226_v10 = vadd.f32 %v1210_v62, %v912_v40  ;;  %v1158_v30 = vmul.f32 %v2542_v49, %v1138_v23 }
 0x223   : > { %v848_v59 = vadd.f32 1e-06, %v832_v58  ;;  %v817_v7 = vsub.f32 %v766_v25, %v2512_v60  ;;  %v1194_v57 = vmul.f32 %v1177_v2, %v913_v0  ;;  %v895_v35 = vmul.f32 %v2529_v4, %v875_v6  ;;  %v2850_v25 = vld [vmem:[#allocation10_spill] sm:$0xff] }
 0x224   : > { %1731 = vrsqrt.f32 %v1111_v9  ;;  %v1096_v36 = vmul.f32 0.03125, %v1080_v53  ;;  %v1139_v46 = vmul.f32 %v1716_v43, %v2213_v11  ;;  %1660 = vmatmul.mubr.f32.gmra.mxu1 %v1226_v10  ;;  %v1178_v60 = vadd.f32 %v2560_v5, %v1158_v30 }
 0x225   : > { %v833_v3 = vmul.f32 0.03125, %v817_v7  ;;  %v1720_v8 = vpop.eup %1719  ;;  %1733 = vrsqrt.f32 %v848_v59  ;;  %v1030_v32 = vpop.xlane.xlu1 %1029  ;;  %v1211_v31 = vmul.f32 %v2493_v61, %v1194_v57  ;;  %v915_v40 = vadd.f32 %v2555_v51, %v895_v35 }
 0x226   : > { %v768_v21 = vpop.xlane.xlu0 %767  ;;  %v1722_v15 = vpop.eup %1721  ;;  %v1112_v19 = vadd.f32 1e-06, %v1096_v36  ;;  %v1081_v42 = vsub.f32 %v1030_v32, %v2520_v63  ;;  %v1195_v11 = vmul.f32 %v1178_v60, %v914_v37  ;;  %v1159_v54 = vmul.f32 %v2542_v49, %v1139_v46 }
 0x227   : > { %v849_v55 = vadd.f32 1e-06, %v833_v3  ;;  %v818_v28 = vsub.f32 %v768_v21, %v2523_v24  ;;  %v1227_v41 = vadd.f32 %v1211_v31, %v913_v0  ;;  %v876_v12 = vmul.f32 %v1718_v29, %v2217_v52 }
 0x228   : > { %1735 = vrsqrt.f32 %v1112_v19  ;;  %v1097_v33 = vmul.f32 0.03125, %v1081_v42  ;;  %v1140_v20 = vmul.f32 %v1720_v8, %v2849_v50  ;;  %v1212_v63 = vmul.f32 %v2493_v61, %v1195_v11  ;;  %v2852_v11 = vld [vmem:[#allocation12_spill] sm:$0xff] }
 0x229   : > { %v834_v56 = vmul.f32 0.03125, %v818_v28  ;;  %v1724_v45 = vpop.eup %1723  ;;  %1737 = vrsqrt.f32 %v849_v55  ;;  %1662 = vmatprep.mubr.f32.mxu1 %v1227_v41  ;;  %v1032_v38 = vpop.xlane.xlu1 %1031  ;;  %v1179_v24 = vadd.f32 %v2560_v5, %v1159_v54  ;;  %v896_v0 = vmul.f32 %v2529_v4, %v876_v12 }
 0x22a   : > { %v770_v34 = vpop.xlane.xlu0 %769  ;;  %v1726_v22 = vpop.eup %1725  ;;  %v1113_v26 = vadd.f32 1e-06, %v1097_v33  ;;  %v1082_v52 = vsub.f32 %v1032_v38, %v2533_v1  ;;  %v1228_v16 = vadd.f32 %v1212_v63, %v914_v37  ;;  %v1160_v6 = vmul.f32 %v2542_v49, %v1140_v20 }
 0x22b   : > { %v850_v27 = vadd.f32 1e-06, %v834_v56  ;;  %v819_v23 = vsub.f32 %v770_v34, %v2536_v13  ;;  %v1196_v58 = vmul.f32 %v1179_v24, %v915_v40  ;;  %v916_v48 = vadd.f32 %v2555_v51, %v896_v0  ;;  %v2853_v56 = vld [vmem:[#allocation13_spill] sm:$0xff]  ;;  %v2854_v0 = vld [vmem:[#allocation14_spill] sm:$0xff] }
 0x22c   : > { %1739 = vrsqrt.f32 %v1113_v26  ;;  %v1098_v43 = vmul.f32 0.03125, %v1082_v52  ;;  %v877_v62 = vmul.f32 %v1722_v15, %v2850_v25  ;;  %1663 = vmatmul.mubr.f32.gmra.mxu1 %v1228_v16  ;;  %v1180_v13 = vadd.f32 %v2560_v5, %v1160_v6  ;;  %v2855_v26 = vld [vmem:[#allocation15_spill] sm:$0xff] }
 0x22d   : > { %v835_v18 = vmul.f32 0.03125, %v819_v23  ;;  %v1728_v2 = vpop.eup %1727  ;;  %1741 = vrsqrt.f32 %v850_v27  ;;  %v1034_v29 = vpop.xlane.xlu1 %1033  ;;  %v1213_v1 = vmul.f32 %v2493_v61, %v1196_v58  ;;  %v1141_v37 = vmul.f32 %v1724_v45, %v2260_v14  ;;  %v2856_v58 = vld [vmem:[#allocation16_spill] sm:$0xff] }
 0x22e   : > { %v772_v9 = vpop.xlane.xlu0 %771  ;;  %v1730_v59 = vpop.eup %1729  ;;  %v1114_v53 = vadd.f32 1e-06, %v1098_v43  ;;  %v1083_v10 = vsub.f32 %v1034_v29, %v2550_v47  ;;  %v1197_v35 = vmul.f32 %v1180_v13, %v916_v48  ;;  %v897_v36 = vmul.f32 %v2529_v4, %v877_v62 }
 0x22f   : > { %v851_v7 = vadd.f32 1e-06, %v835_v18  ;;  %v820_v57 = vsub.f32 %v772_v9, %v2563_v39  ;;  %v1229_v30 = vadd.f32 %v1213_v1, %v915_v40  ;;  %v1161_v3 = vmul.f32 %v2542_v49, %v1141_v37  ;;  %v2857_v37 = vld [vmem:[#allocation17_spill] sm:$0xff] }
 0x230   : > { %1743 = vrsqrt.f32 %v1114_v53  ;;  %v1099_v46 = vmul.f32 0.03125, %v1083_v10  ;;  %v878_v32 = vmul.f32 %v1726_v22, %v2264_v44  ;;  %v1214_v31 = vmul.f32 %v2493_v61, %v1197_v35  ;;  %v2851_v44 = vld [vmem:[#allocation11_spill] sm:$0xff] }
 0x231   : > { %v836_v8 = vmul.f32 0.03125, %v820_v57  ;;  %v1732_v21 = vpop.eup %1731  ;;  %1745 = vrsqrt.f32 %v851_v7  ;;  %1665 = vmatprep.mubr.f32.mxu1 %v1229_v30  ;;  %v1036_v14 = vpop.xlane.xlu1 %1035  ;;  %v917_v47 = vadd.f32 %v2555_v51, %v897_v36  ;;  %v1181_v39 = vadd.f32 %v2560_v5, %v1161_v3  ;;  %v2858_v7 = vld [vmem:[#allocation18_spill] sm:$0xff] }
 0x232   : > { %v1734_v60 = vpop.eup %1733  ;;  %v1115_v40 = vadd.f32 1e-06, %v1099_v46  ;;  %v1084_v19 = vsub.f32 %v1036_v14, %v2568_v17  ;;  %v898_v55 = vmul.f32 %v2529_v4, %v878_v32  ;;  %v1230_v42 = vadd.f32 %v1214_v31, %v916_v48 }
 0x233   : > { %v852_v15 = vadd.f32 1e-06, %v836_v8  ;;  %v1198_v28 = vmul.f32 %v1181_v39, %v917_v47  ;;  %v1142_v41 = vmul.f32 %v1728_v2, %v2851_v44  ;;  %v879_v54 = vmul.f32 %v1730_v59, %v2852_v11 }
 0x234   : > { %1747 = vrsqrt.f32 %v1115_v40  ;;  %v1100_v12 = vmul.f32 0.03125, %v1084_v19  ;;  %v918_v33 = vadd.f32 %v2555_v51, %v898_v55  ;;  %v1143_v50 = vmul.f32 %v1732_v21, %v2853_v56  ;;  %1666 = vmatmul.mubr.f32.gmra.mxu1 %v1230_v42  ;;  %v2862_v56 = vld [vmem:[#allocation22_spill] sm:$0xff] }
 0x235   : > { %v1736_v20 = vpop.eup %1735  ;;  %1749 = vrsqrt.f32 %v852_v15  ;;  %v1215_v45 = vmul.f32 %v2493_v61, %v1198_v28  ;;  %v1162_v17 = vmul.f32 %v2542_v49, %v1142_v41  ;;  %v899_v38 = vmul.f32 %v2529_v4, %v879_v54 }
 0x236   : > { %v1738_v34 = vpop.eup %1737  ;;  %v1116_v63 = vadd.f32 1e-06, %v1100_v12  ;;  %v1163_v24 = vmul.f32 %v2542_v49, %v1143_v50  ;;  %v880_v22 = vmul.f32 %v1734_v60, %v2854_v0  ;;  %v1144_v27 = vmul.f32 %v1736_v20, %v2855_v26  ;;  %v2860_v60 = vld [vmem:[#allocation20_spill] sm:$0xff]  ;;  %v2861_v12 = vld [vmem:[#allocation21_spill] sm:$0xff] }
 0x237   : > { %v1231_v52 = vadd.f32 %v1215_v45, %v917_v47  ;;  %v1182_v23 = vadd.f32 %v2560_v5, %v1162_v17  ;;  %v919_v16 = vadd.f32 %v2555_v51, %v899_v38  ;;  %v881_v48 = vmul.f32 %v1738_v34, %v2856_v58  ;;  %v2859_v47 = vld [vmem:[#allocation19_spill] sm:$0xff] }
 0x238   : > { %1751 = vrsqrt.f32 %v1116_v63  ;;  %v1183_v6 = vadd.f32 %v2560_v5, %v1163_v24  ;;  %v900_v43 = vmul.f32 %v2529_v4, %v880_v22  ;;  %v1164_v18 = vmul.f32 %v2542_v49, %v1144_v27  ;;  %v2863_v22 = vld [vmem:[#allocation23_spill] sm:$0xff] }
 0x239   : > { %v1740_v25 = vpop.eup %1739  ;;  %1668 = vmatprep.mubr.f32.mxu1 %v1231_v52  ;;  %v1199_v62 = vmul.f32 %v1182_v23, %v918_v33  ;;  %v901_v2 = vmul.f32 %v2529_v4, %v881_v48 }
 0x23a   : > { %v1742_v29 = vpop.eup %1741  ;;  %v1200_v9 = vmul.f32 %v1183_v6, %v919_v16  ;;  %v920_v1 = vadd.f32 %v2555_v51, %v900_v43  ;;  %v1184_v13 = vadd.f32 %v2560_v5, %v1164_v18  ;;  %v1145_v59 = vmul.f32 %v1740_v25, %v2857_v37 }
 0x23b   : > { %v1216_v53 = vmul.f32 %v2493_v61, %v1199_v62  ;;  %v882_v10 = vmul.f32 %v1742_v29, %v2858_v7  ;;  %v921_v46 = vadd.f32 %v2555_v51, %v901_v2 }
 0x23c   : > { %v1217_v57 = vmul.f32 %v2493_v61, %v1200_v9  ;;  %v1201_v30 = vmul.f32 %v1184_v13, %v920_v1  ;;  %v1165_v35 = vmul.f32 %v2542_v49, %v1145_v59 }
 0x23d   : > { %v1744_v36 = vpop.eup %1743  ;;  %v1232_v3 = vadd.f32 %v1216_v53, %v918_v33  ;;  %v902_v8 = vmul.f32 %v2529_v4, %v882_v10  ;;  %v2864_v10 = vld [vmem:[#allocation3_spill] sm:$0xff] }
 0x23e   : > { %v1746_v32 = vpop.eup %1745  ;;  %v1233_v21 = vadd.f32 %v1217_v57, %v919_v16  ;;  %v1218_v14 = vmul.f32 %v2493_v61, %v1201_v30  ;;  %v1185_v31 = vadd.f32 %v2560_v5, %v1165_v35  ;;  %v1146_v39 = vmul.f32 %v1744_v36, %v2859_v47  ;;  %v1753_v35 = vld [vmem:[%s2798_s3] sm:$0x7] }
 0x23f   : > { %1669 = vmatmul.mubr.f32.gmra.mxu1 %v1232_v3  ;;  %v883_v40 = vmul.f32 %v1746_v32, %v2860_v60  ;;  %v922_v11 = vadd.f32 %v2555_v51, %v902_v8  ;;  %v296_v57 = vsub.s32 2, %v2864_v10  ;;  %v2714_v3 = vld [vmem:[%s2800_s5 + $0x4] ss:$0 sm:$0xff] }
 0x240   : > { %1671 = vmatprep.mubr.f32.mxu1 %v1233_v21  ;;  %v1234_v15 = vadd.f32 %v1218_v14, %v920_v1  ;;  %v1202_v19 = vmul.f32 %v1185_v31, %v921_v46  ;;  %v1166_v55 = vmul.f32 %v2542_v49, %v1146_v39 }
 0x241   : > { %v1748_v42 = vpop.eup %1747  ;;  %v903_v28 = vmul.f32 %v2529_v4, %v883_v40  ;;  %v2709_v36 = vrot.slane %v1753_v35, %v296_v57 }
 0x242   : > { %v1750_v44 = vpop.eup %1749  ;;  %v1219_v41 = vmul.f32 %v2493_v61, %v1202_v19  ;;  %v1186_v54 = vadd.f32 %v2560_v5, %v1166_v55  ;;  %v1147_v33 = vmul.f32 %v1748_v42, %v2861_v12 }
 0x243   : > { %1672 = vmatmul.mubr.f32.gmra.mxu1 %v1234_v15  ;;  %v884_v50 = vmul.f32 %v1750_v44, %v2862_v56  ;;  %v923_v34 = vadd.f32 %v2555_v51, %v903_v28 }
 0x244   : > { %v1235_v20 = vadd.f32 %v1219_v41, %v921_v46  ;;  %v1203_v45 = vmul.f32 %v1186_v54, %v922_v11  ;;  %v1167_v17 = vmul.f32 %v2542_v49, %v1147_v33 }
 0x245   : > { %v1752_v38 = vpop.eup %1751  ;;  %v904_v0 = vmul.f32 %v2529_v4, %v884_v50  ;;  %v1602_v4 = vpop.f32.mrf.mxu1 }
 0x246   : > { %1674 = vmatprep.mubr.f32.mxu1 %v1235_v20  ;;  %v1220_v63 = vmul.f32 %v2493_v61, %v1203_v45  ;;  %v1187_v24 = vadd.f32 %v2560_v5, %v1167_v17  ;;  %v1148_v26 = vmul.f32 %v1752_v38, %v2863_v22  ;;  %v583_v8 = vadd.f32 %v1602_v4, %v2709_v36 }
 0x247   : > { %v924_v58 = vadd.f32 %v2555_v51, %v904_v0  ;;  %v577_v62 = vpop.f32.mrf.mxu1 }
 0x248   : > { %v1236_v27 = vadd.f32 %v1220_v63, %v922_v11  ;;  %v1204_v52 = vmul.f32 %v1187_v24, %v923_v34  ;;  %v1168_v23 = vmul.f32 %v2542_v49, %v1148_v26  ;;  %v578_v14 = vadd.f32 %v577_v62, %v2709_v36 }
 0x249   : > { %v1605_v2 = vpop.f32.mrf.mxu1 }
 0x24a   : > { %1675 = vmatmul.mubr.f32.gmra.mxu1 %v1236_v27  ;;  %v1221_v16 = vmul.f32 %v2493_v61, %v1204_v52  ;;  %v1188_v48 = vadd.f32 %v2560_v5, %v1168_v23  ;;  %v593_v40 = vadd.f32 %v1605_v2, %v2709_v36 }
 0x24b   : > { %v587_v29 = vpop.f32.mrf.mxu1 }
 0x24c   : > { %v1237_v6 = vadd.f32 %v1221_v16, %v923_v34  ;;  %v1205_v43 = vmul.f32 %v1188_v48, %v924_v58  ;;  %v588_v55 = vadd.f32 %v587_v29, %v2709_v36 }
 0x24d   : > { %v1608_v9 = vpop.f32.mrf.mxu1 }
 0x24e   : > { %1677 = vmatprep.mubr.f32.mxu1 %v1237_v6  ;;  %v1222_v18 = vmul.f32 %v2493_v61, %v1205_v43  ;;  %v603_v11 = vadd.f32 %v1608_v9, %v2709_v36 }
 0x24f   : > { %v597_v49 = vpop.f32.mrf.mxu1 }
 0x250   : > { %v1238_v25 = vadd.f32 %v1222_v18, %v924_v58  ;;  %v598_v33 = vadd.f32 %v597_v49, %v2709_v36 }
 0x251   : > { %v1611_v1 = vpop.f32.mrf.mxu1 }
 0x252   : > { %1678 = vmatmul.mubr.f32.gmra.mxu1 %v1238_v25  ;;  %v613_v17 = vadd.f32 %v1611_v1, %v2709_v36 }
 0x253   : > { %v607_v13 = vpop.f32.mrf.mxu1 }
 0x254   : > { %v608_v63 = vadd.f32 %v607_v13, %v2709_v36 }
 0x255   : > { %v1614_v37 = vpop.f32.mrf.mxu1 }
 0x256   : > { %v623_v27 = vadd.f32 %v1614_v37, %v2709_v36 }
 0x257   : > { %v617_v51 = vpop.f32.mrf.mxu1 }
 0x258   : > { %v618_v16 = vadd.f32 %v617_v51, %v2709_v36 }
 0x259   : > { %v1617_v59 = vpop.f32.mrf.mxu1 }
 0x25a   : > { %v633_v43 = vadd.f32 %v1617_v59, %v2709_v36 }
 0x25b   : > { %v2695_v5 = vpop.f32.mrf.mxu1 }
 0x25c   : > { %v628_v62 = vadd.f32 %v2695_v5, %v2709_v36 }
 0x25d   : > { %v2697_v53 = vpop.f32.mrf.mxu1 }
 0x25e   : > { %v643_v1 = vadd.f32 %v2697_v53, %v2709_v36 }
 0x25f   : > { %v2699_v7 = vpop.f32.mrf.mxu1 }
 0x260   : > { %v638_v51 = vadd.f32 %v2699_v7, %v2709_v36 }
 0x261   : > { %v2701_v61 = vpop.f32.mrf.mxu1 }
 0x262   : > { %v653_v53 = vadd.f32 %v2701_v61, %v2709_v36 }
 0x263   : > { %v2704_v30 = vpop.f32.mrf.mxu1 }
 0x2da   : > { %v1658_v46 = vpop.f32.mrf.mxu1 }
 0x2db   : > { %v1331_v32 = vadd.f32 %v1658_v46, %v2714_v3 }
 0x2dc   : > { %v1325_v21 = vpop.f32.mrf.mxu1 }
 0x2dd   : > { %v1405_v31 = vadd.f32 %v1331_v32, %v583_v8  ;;  %v1326_v47 = vadd.f32 %v2714_v3, %v1325_v21  ;;  %v648_v8 = vadd.f32 %v2704_v30, %v2709_v36 }
 0x2df   : > { %1421 = vst.msk [vmem:[%s2723_s11 + $0x8] sm:$0xff] %vm301_vm0, %v1405_v31  ;;  %v1404_v39 = vadd.f32 %v1326_v47, %v578_v14 }
 0x2e1   : > { %1420 = vst.msk [vmem:[%s2723_s11] sm:$0xff] %vm301_vm0, %v1404_v39 }
 0x2e4   : > { %v1661_v60 = vpop.f32.mrf.mxu1 }
 0x2e5   : > { %v1341_v15 = vadd.f32 %v1661_v60, %v2714_v3 }
 0x2e6   : > { %v1335_v19 = vpop.f32.mrf.mxu1 }
 0x2e7   : > { %v1407_v42 = vadd.f32 %v1341_v15, %v593_v40  ;;  %v1336_v28 = vadd.f32 %v2714_v3, %v1335_v19 }
 0x2e9   : > { %1423 = vst.msk [vmem:[%s2723_s11 + $0x18] sm:$0xff] %vm301_vm0, %v1407_v42  ;;  %v1406_v44 = vadd.f32 %v1336_v28, %v588_v55 }
 0x2eb   : > { %1422 = vst.msk [vmem:[%s2723_s11 + $0x10] sm:$0xff] %vm301_vm0, %v1406_v44 }
 0x2ec   : > { %v1664_v41 = vpop.f32.mrf.mxu1 }
 0x2ed   : > { %v1351_v54 = vadd.f32 %v1664_v41, %v2714_v3 }
 0x2ee   : > { %v1345_v12 = vpop.f32.mrf.mxu1 }
 0x2ef   : > { %v1409_v56 = vadd.f32 %v1351_v54, %v603_v11  ;;  %v1346_v50 = vadd.f32 %v2714_v3, %v1345_v12 }
 0x2f1   : > { %1425 = vst.msk [vmem:[%s2723_s11 + $0x28] sm:$0xff] %vm301_vm0, %v1409_v56  ;;  %v1408_v20 = vadd.f32 %v1346_v50, %v598_v33 }
 0x2f3   : > { %1424 = vst.msk [vmem:[%s2723_s11 + $0x20] sm:$0xff] %vm301_vm0, %v1408_v20 }
 0x2f4   : > { %v1667_v45 = vpop.f32.mrf.mxu1 }
 0x2f5   : > { %v1361_v38 = vadd.f32 %v1667_v45, %v2714_v3 }
 0x2f6   : > { %v1355_v34 = vpop.f32.mrf.mxu1 }
 0x2f7   : > { %v1411_v24 = vadd.f32 %v1361_v38, %v613_v17  ;;  %v1356_v0 = vadd.f32 %v2714_v3, %v1355_v34 }
 0x2f9   : > { %1427 = vst.msk [vmem:[%s2723_s11 + $0x38] sm:$0xff] %vm301_vm0, %v1411_v24  ;;  %v1410_v22 = vadd.f32 %v1356_v0, %v608_v63 }
 0x2fb   : > { %1426 = vst.msk [vmem:[%s2723_s11 + $0x30] sm:$0xff] %vm301_vm0, %v1410_v22 }
 0x2ff   : > { %v1670_v26 = vpop.f32.mrf.mxu1 }
 0x300   : > { %v1371_v52 = vadd.f32 %v1670_v26, %v2714_v3 }
 0x301   : > { %v1365_v23 = vpop.f32.mrf.mxu1 }
 0x302   : > { %v1413_v58 = vadd.f32 %v1371_v52, %v623_v27  ;;  %v1366_v48 = vadd.f32 %v2714_v3, %v1365_v23 }
 0x303   : > { %v1673_v6 = vpop.f32.mrf.mxu1 }
 0x304   : > { %1429 = vst.msk [vmem:[%s2723_s11 + $0x48] sm:$0xff] %vm301_vm0, %v1413_v58  ;;  %v1412_v18 = vadd.f32 %v1366_v48, %v618_v16  ;;  %v1381_v25 = vadd.f32 %v1673_v6, %v2714_v3 }
 0x305   : > { %v1375_v4 = vpop.f32.mrf.mxu1 }
 0x306   : > { %1428 = vst.msk [vmem:[%s2723_s11 + $0x40] sm:$0xff] %vm301_vm0, %v1412_v18  ;;  %v1415_v2 = vadd.f32 %v1381_v25, %v633_v43  ;;  %v1376_v29 = vadd.f32 %v2714_v3, %v1375_v4 }
 0x308   : > { %1431 = vst.msk [vmem:[%s2723_s11 + $0x58] sm:$0xff] %vm301_vm0, %v1415_v2  ;;  %v1414_v9 = vadd.f32 %v1376_v29, %v628_v62 }
 0x30a   : > { %1430 = vst.msk [vmem:[%s2723_s11 + $0x50] sm:$0xff] %vm301_vm0, %v1414_v9  ;;  %v1676_v49 = vpop.f32.mrf.mxu1 }
 0x30b   : > { %v1391_v13 = vadd.f32 %v1676_v49, %v2714_v3 }
 0x30c   : > { %v1385_v37 = vpop.f32.mrf.mxu1 }
 0x30d   : > { %v1417_v59 = vadd.f32 %v1391_v13, %v643_v1  ;;  %v1386_v5 = vadd.f32 %v2714_v3, %v1385_v37 }
 0x30f   : > { %1433 = vst.msk [vmem:[%s2723_s11 + $0x68] sm:$0xff] %vm301_vm0, %v1417_v59  ;;  %v1416_v10 = vadd.f32 %v1386_v5, %v638_v51 }
 0x311   : > { %1432 = vst.msk [vmem:[%s2723_s11 + $0x60] sm:$0xff] %vm301_vm0, %v1416_v10 }
 0x312   : > { %v1679_v57 = vpop.f32.mrf.mxu1 }
 0x313   : > { %v1401_v35 = vadd.f32 %v1679_v57, %v2714_v3 }
 0x314   : > { %v1395_v46 = vpop.f32.mrf.mxu1 }
 0x315   : > { %v1419_v32 = vadd.f32 %v1401_v35, %v653_v53  ;;  %v1396_v7 = vadd.f32 %v2714_v3, %v1395_v46 }
 0x317   : > { %1435 = vst.msk [vmem:[%s2723_s11 + $0x78] sm:$0xff] %vm301_vm0, %v1419_v32  ;;  %v1418_v21 = vadd.f32 %v1396_v7, %v648_v8 }
 0x319   : > { %1434 = vst.msk [vmem:[%s2723_s11 + $0x70] sm:$0xff] %vm301_vm0, %v1418_v21 }
 0x31a PF: > { %s17_s23 = sadd.s32 1, %s1760_s23  }
 0x31b   : > { %p14_p4 = scmp.ge.s32.totalorder %s17_s23, 6  }
 0x31d   :  { %16 = sbr.rel (!%p14_p4) target bundleno = 2 (0x2), region = 74 }

</bundles_post_ra>
